<compile_context>
chip_gen: v5e
topology: v5e:2x2
jax: 0.10.0
libtpu: 0.0.40
codegen_flags: <defaults>
</compile_context>

<pallas_src>
import jax
import jax.numpy as jnp
from jax import lax
from jax.experimental import pallas as pl
from jax.experimental.pallas import tpu as pltpu


def _round_up(v, m):
    return ((v + m - 1) // m) * m


def _images_per_step(B):
    """Fold the whole batch into one grid step on single-TC chips (v5e/v6e);
    keep one image per grid step on v7x so 'parallel' maps images to the two
    TensorCores."""
    try:
        kind = jax.devices()[0].device_kind.lower()
        if "v7" in kind:
            return 1
    except Exception:
        pass
    return B


def make_convgru_kernel(H, W, Ci, Ch, K, n_img):
    P = K // 2
    C = Ci + Ch
    C_pad = _round_up(C, 8)        # per-tap input rows, padded for alignment
    KK = K * K
    HW = H * W
    GAP = 128                      # zero halo / image separator (>= P*W + P)
    N = n_img * HW                 # matmul N: pixels of all images this step
    buf_len = GAP + n_img * (HW + GAP)

    assert HW % 128 == 0, "H*W must be a multiple of 128 for lane-dense stores"
    assert P * W + P <= GAP, "conv halo must fit inside the zero gap"
    # (If Ch is ever not a multiple of 8, gate-row slices / per-tap col2 rows
    #  become unaligned; still correct, just pad Ch host-side for speed.)

    bases = [GAP + b * (HW + GAP) for b in range(n_img)]   # 128-aligned

    def kernel(x_ref, h_ref, w1_ref, w2_ref, b1_ref, out_ref,
               buf_ref, col1_ref, col2_ref):
        # ---- zero-bordered combined buffer: channel rows = [h ; x ; 0-pad] --
        # Fully rewritten every step: no cross-step scratch state (megacore /
        # multi-step safe).
        buf_ref[...] = jnp.zeros_like(buf_ref)
        for b in range(n_img):
            buf_ref[0:Ch, bases[b]:bases[b] + HW] = h_ref[b]
            buf_ref[Ch:C, bases[b]:bases[b] + HW] = x_ref[b]

        # Per-kx lane masks: a +-dx lane shift in the flat row-major pixel
        # axis wraps across image rows; kill the wrapped columns. Built once,
        # reused by both passes.
        col = lax.broadcasted_iota(jnp.int32, (1, HW), 1) % W
        lane_masks = []
        for kx in range(K):
            dx = kx - P
            if dx == 0:
                lane_masks.append(None)
            else:
                valid = jnp.logical_and(col + dx >= 0, col + dx < W)
                lane_masks.append(valid.astype(jnp.float32))

        def tap_off(ky, kx):
            # vertical shift = whole rows (W lanes), horizontal shift = +-1.
            return (ky - P) * W + (kx - P)

        # ---- pass 1: im2col over [h ; x], ONE fused matmul for r | u | o_x --
        for t in range(KK):
            ky, kx = divmod(t, K)
            for b in range(n_img):
                s = bases[b] + tap_off(ky, kx)
                slab = buf_ref[:, s:s + HW]                    # (C_pad, HW)
                if lane_masks[kx] is not None:
                    slab = slab * lane_masks[kx]
                col1_ref[t * C_pad:(t + 1) * C_pad,
                         b * HW:(b + 1) * HW] = slab

        acc1 = jnp.dot(w1_ref[...], col1_ref[...],
                       preferred_element_type=jnp.float32) + b1_ref[...]
        reset = jax.nn.sigmoid(acc1[0:Ch])                     # (Ch, N)
        update = jax.nn.sigmoid(acc1[Ch:2 * Ch])               # (Ch, N)
        out_x = acc1[2 * Ch:3 * Ch]                            # conv_o(x) + b_o

        # ---- pass 2: im2col over h*reset, ONE fused matmul for o_h ----------
        for b in range(n_img):
            buf_ref[0:Ch, bases[b]:bases[b] + HW] = (
                h_ref[b] * reset[:, b * HW:(b + 1) * HW])
        for t in range(KK):
            ky, kx = divmod(t, K)
            for b in range(n_img):
                s = bases[b] + tap_off(ky, kx)
                slab = buf_ref[0:Ch, s:s + HW]                 # (Ch, HW)
                if lane_masks[kx] is not None:
                    slab = slab * lane_masks[kx]
                col2_ref[t * Ch:(t + 1) * Ch,
                         b * HW:(b + 1) * HW] = slab

        out = jnp.tanh(jnp.dot(w2_ref[...], col2_ref[...],
                               preferred_element_type=jnp.float32) + out_x)

        # ---- GRU blend, per-image lane-dense writeback -----------------------
        for b in range(n_img):
            u = update[:, b * HW:(b + 1) * HW]
            o = out[:, b * HW:(b + 1) * HW]
            out_ref[b] = (h_ref[b] * (1.0 - u) + o * u).astype(out_ref.dtype)

    return kernel, buf_len, N


def conv_gru_cell(x_nchw, h_nchw, w1, w2, b1, *, kernel_size,
                  images_per_step=None):
    """ConvGRU cell forward.

    x_nchw: (B, Ci, H, W), h_nchw: (B, Ch, H, W)  (pass zeros if state is None)
    w1: (3*Ch, K*K*C_pad)  fused per-tap [reset|update|out_x] weights,
        input-channel order [h, x, zero-pad] per tap (from prep_gru_weights)
    w2: (Ch, K*K*Ch)       per-tap out-gate h-part
    b1: (3*Ch, 1)          fused [b_r; b_u; b_o]
    """
    B, Ci, H, W = x_nchw.shape
    Ch = h_nchw.shape[1]
    K = kernel_size
    C = Ci + Ch
    C_pad = _round_up(C, 8)
    KK = K * K
    HW = H * W

    n_img = _images_per_step(B) if images_per_step is None else images_per_step
    assert B % n_img == 0

    assert w1.shape == (3 * Ch, KK * C_pad)
    assert w2.shape == (Ch, KK * Ch)
    assert b1.shape == (3 * Ch, 1)

    # Lane-dense "pixels on lanes" views (row-major reshapes, free outside).
    x_flat = x_nchw.reshape(B, Ci, HW)
    h_flat = h_nchw.reshape(B, Ch, HW)

    kernel, buf_len, N = make_convgru_kernel(H, W, Ci, Ch, K, n_img)

    grid_spec = pltpu.PrefetchScalarGridSpec(
        num_scalar_prefetch=0,
        grid=(B // n_img,),
        in_specs=[
            pl.BlockSpec((n_img, Ci, HW), lambda g: (g, 0, 0)),
            pl.BlockSpec((n_img, Ch, HW), lambda g: (g, 0, 0)),
            pl.BlockSpec((3 * Ch, KK * C_pad), lambda g: (0, 0)),
            pl.BlockSpec((Ch, KK * Ch), lambda g: (0, 0)),
            pl.BlockSpec((3 * Ch, 1), lambda g: (0, 0)),
        ],
        out_specs=pl.BlockSpec((n_img, Ch, HW), lambda g: (g, 0, 0)),
        scratch_shapes=[
            pltpu.VMEM((C_pad, buf_len), jnp.float32),   # padded [h;x] image
            pltpu.VMEM((KK * C_pad, N), jnp.float32),    # im2col pass 1
            pltpu.VMEM((KK * Ch, N), jnp.float32),       # im2col pass 2
        ],
    )

    out_flat = pl.pallas_call(
        kernel,
        out_shape=jax.ShapeDtypeStruct((B, Ch, HW), x_nchw.dtype),
        grid_spec=grid_spec,
        compiler_params=pltpu.CompilerParams(
            dimension_semantics=("parallel",)),
    )(x_flat, h_flat, w1, w2, b1)

    return out_flat.reshape(B, Ch, H, W)


def prep_gru_weights(wr_oihw, wu_oihw, wo_oihw, br, bu, bo, Ci, Ch, K):
    """Pack PyTorch-layout (Ch, Ci+Ch, K, K) conv weights into the fused
    matmul layouts used by the kernel.

    Per tap, input columns are reordered to [h (Ch), x (Ci), zeros (pad)] to
    match the kernel's buffer rows; the out-gate rows of w1 keep ONLY the
    x-input columns (the h-input part is applied to h*reset in pass 2 via w2).
    """
    C = Ci + Ch
    C_pad = _round_up(C, 8)
    KK = K * K

    def taps(w_oihw):
        # (O, I, K, K) -> (K*K, O, I), tap index t = ky*K + kx.
        return jnp.transpose(w_oihw, (2, 3, 0, 1)).reshape(KK, Ch, C)

    def reorder_pad(w_t, zero_h_cols=False):
        h_part = w_t[:, :, Ci:]                        # h-input columns
        x_part = w_t[:, :, :Ci]                        # x-input columns
        if zero_h_cols:
            h_part = jnp.zeros_like(h_part)
        pad = jnp.zeros((KK, Ch, C_pad - C), w_t.dtype)
        return jnp.concatenate([h_part, x_part, pad], axis=-1)  # (KK, Ch, C_pad)

    wr_t = reorder_pad(taps(wr_oihw))
    wu_t = reorder_pad(taps(wu_oihw))
    wox_t = reorder_pad(taps(wo_oihw), zero_h_cols=True)

    # (KK, 3*Ch, C_pad) -> (3*Ch, KK*C_pad): row = gate output, col = tap*C_pad + ch
    w1 = jnp.concatenate([wr_t, wu_t, wox_t], axis=1)
    w1 = jnp.transpose(w1, (1, 0, 2)).reshape(3 * Ch, KK * C_pad)

    woh = taps(wo_oihw)[:, :, Ci:]                     # (KK, Ch, Ch) h-part
    w2 = jnp.transpose(woh, (1, 0, 2)).reshape(Ch, KK * Ch)

    b1 = jnp.concatenate([br, bu, bo]).reshape(3 * Ch, 1)
    return w1, w2, b1


def orthogonal_conv_weight(key, out_ch, in_ch, k):
    """Mimics nn.init.orthogonal_ on a (out_ch, in_ch, k, k) conv weight."""
    flat = in_ch * k * k
    a = jax.random.normal(key, (flat, flat), dtype=jnp.float32)
    q, _ = jnp.linalg.qr(a)
    w_flat = q[:, :out_ch].T                           # orthonormal rows
    return w_flat.reshape(out_ch, in_ch, k, k)         # OIHW (PyTorch layout)


def reference_convgru(x, h, wr_oihw, wu_oihw, wo_oihw, br, bu, bo):
    """Pure-JAX NCHW reference mirroring the PyTorch module."""
    def conv(inp, w, b):
        y = lax.conv_general_dilated(
            inp, w, window_strides=(1, 1), padding="SAME",
            dimension_numbers=("NCHW", "OIHW", "NCHW"),
            precision=lax.Precision.HIGHEST)
        return y + b.reshape(1, -1, 1, 1)

    combined = jnp.concatenate([x, h], axis=1)
    update = jax.nn.sigmoid(conv(combined, wu_oihw, bu))
    reset = jax.nn.sigmoid(conv(combined, wr_oihw, br))
    out = jnp.tanh(conv(jnp.concatenate([x, h * reset], axis=1), wo_oihw, bo))
    return h * (1.0 - update) + out * update


if __name__ == "__main__":
    B, Ci, H, W = 2, 4, 16, 16
    Ch, K = 8, 3
    C = Ci + Ch

    key = jax.random.PRNGKey(0)
    kx_, kh_, kr_, ku_, ko_ = jax.random.split(key, 5)

    # PyTorch forward is NCHW; keep that layout end-to-end.
    x = jax.random.normal(kx_, (B, Ci, H, W), dtype=jnp.float32)
    h = jax.random.normal(kh_, (B, Ch, H, W), dtype=jnp.float32)

    # Parameter init matching the module: orthogonal conv weights, zero bias.
    wr_oihw = orthogonal_conv_weight(kr_, Ch, C, K)
    wu_oihw = orthogonal_conv_weight(ku_, Ch, C, K)
    wo_oihw = orthogonal_conv_weight(ko_, Ch, C, K)
    br = jnp.zeros((Ch,), jnp.float32)
    bu = jnp.zeros((Ch,), jnp.float32)
    bo = jnp.zeros((Ch,), jnp.float32)

    w1, w2, b1 = prep_gru_weights(wr_oihw, wu_oihw, wo_oihw,
                                  br, bu, bo, Ci, Ch, K)

    new_h = conv_gru_cell(x, h, w1, w2, b1, kernel_size=K)
    new_h = jax.block_until_ready(new_h)

    ref = reference_convgru(x, h, wr_oihw, wu_oihw, wo_oihw, br, bu, bo)
    ref = jax.block_until_ready(ref)

    assert new_h.shape == (B, Ch, H, W)
    max_err = float(jnp.max(jnp.abs(new_h - ref)))
    assert jnp.allclose(new_h, ref, atol=5e-4, rtol=5e-4), max_err

    print("KERNEL_OK")
</pallas_src>

<mosaic_0001>
module attributes {stable_mosaic.version = 11 : i64} {
  func.func @kernel(%arg0: i32, %arg1: memref<2x4x256xf32, #tpu.memory_space<vmem>>, %arg2: memref<2x8x256xf32, #tpu.memory_space<vmem>>, %arg3: memref<24x144xf32, #tpu.memory_space<vmem>>, %arg4: memref<8x72xf32, #tpu.memory_space<vmem>>, %arg5: memref<24x1xf32, #tpu.memory_space<vmem>>, %arg6: memref<2x8x256xf32, #tpu.memory_space<vmem>>, %arg7: memref<16x896xf32, #tpu.memory_space<vmem>>, %arg8: memref<144x512xf32, #tpu.memory_space<vmem>>, %arg9: memref<72x512xf32, #tpu.memory_space<vmem>>) attributes {dimension_semantics = [#tpu.dimension_semantics<parallel>], iteration_bounds = array<i64: 1>, scalar_prefetch = 0 : i64, scratch_operands = 3 : i64, tpu.core_type = #tpu.core_type<tc>, window_params = [{transform_indices = @transform_0, window_bounds = array<i64: 2, 4, 256>}, {transform_indices = @transform_1, window_bounds = array<i64: 2, 8, 256>}, {pipeline_mode = #tpu.pipeline_mode<synchronous>, transform_indices = @transform_2, window_bounds = array<i64: 24, 144>}, {pipeline_mode = #tpu.pipeline_mode<synchronous>, transform_indices = @transform_3, window_bounds = array<i64: 8, 72>}, {pipeline_mode = #tpu.pipeline_mode<synchronous>, transform_indices = @transform_4, window_bounds = array<i64: 24, 1>}, {transform_indices = @transform_5, window_bounds = array<i64: 2, 8, 256>}]} {
    %cst = arith.constant 0.000000e+00 : f32
    %0 = vector.broadcast %cst : f32 to vector<16x896xf32>
    %c0 = arith.constant 0 : index
    %c0_0 = arith.constant 0 : index
    %1 = vector.load %arg7[%c0, %c0_0] : memref<16x896xf32, #tpu.memory_space<vmem>>, vector<16x896xf32>
    tpu.vector_store %arg7[%c0, %c0_0], %0 {strides = array<i32>} : memref<16x896xf32, #tpu.memory_space<vmem>>, vector<16x896xf32>,
    %c0_1 = arith.constant 0 : index
    %c0_2 = arith.constant 0 : index
    %c0_3 = arith.constant 0 : index
    %2 = vector.load %arg2[%c0_1, %c0_2, %c0_3] : memref<2x8x256xf32, #tpu.memory_space<vmem>>, vector<1x8x256xf32>
    %3 = vector.shape_cast %2 : vector<1x8x256xf32> to vector<8x256xf32>
    %c0_4 = arith.constant 0 : index
    %c128 = arith.constant 128 : index
    %4 = vector.load %arg7[%c0_4, %c128] : memref<16x896xf32, #tpu.memory_space<vmem>>, vector<8x256xf32>
    tpu.vector_store %arg7[%c0_4, %c128], %3 {strides = array<i32>} : memref<16x896xf32, #tpu.memory_space<vmem>>, vector<8x256xf32>,
    %c0_5 = arith.constant 0 : index
    %c0_6 = arith.constant 0 : index
    %c0_7 = arith.constant 0 : index
    %5 = vector.load %arg1[%c0_5, %c0_6, %c0_7] : memref<2x4x256xf32, #tpu.memory_space<vmem>>, vector<1x4x256xf32>
    %6 = vector.shape_cast %5 : vector<1x4x256xf32> to vector<4x256xf32>
    %c8 = arith.constant 8 : index
    %c128_8 = arith.constant 128 : index
    %7 = vector.load %arg7[%c8, %c128_8] : memref<16x896xf32, #tpu.memory_space<vmem>>, vector<4x256xf32>
    tpu.vector_store %arg7[%c8, %c128_8], %6 {strides = array<i32>} : memref<16x896xf32, #tpu.memory_space<vmem>>, vector<4x256xf32>,
    %c1 = arith.constant 1 : index
    %c0_9 = arith.constant 0 : index
    %c0_10 = arith.constant 0 : index
    %8 = vector.load %arg2[%c1, %c0_9, %c0_10] : memref<2x8x256xf32, #tpu.memory_space<vmem>>, vector<1x8x256xf32>
    %9 = vector.shape_cast %8 : vector<1x8x256xf32> to vector<8x256xf32>
    %c0_11 = arith.constant 0 : index
    %c512 = arith.constant 512 : index
    %10 = vector.load %arg7[%c0_11, %c512] : memref<16x896xf32, #tpu.memory_space<vmem>>, vector<8x256xf32>
    tpu.vector_store %arg7[%c0_11, %c512], %9 {strides = array<i32>} : memref<16x896xf32, #tpu.memory_space<vmem>>, vector<8x256xf32>,
    %c1_12 = arith.constant 1 : index
    %c0_13 = arith.constant 0 : index
    %c0_14 = arith.constant 0 : index
    %11 = vector.load %arg1[%c1_12, %c0_13, %c0_14] : memref<2x4x256xf32, #tpu.memory_space<vmem>>, vector<1x4x256xf32>
    %12 = vector.shape_cast %11 : vector<1x4x256xf32> to vector<4x256xf32>
    %c8_15 = arith.constant 8 : index
    %c512_16 = arith.constant 512 : index
    %13 = vector.load %arg7[%c8_15, %c512_16] : memref<16x896xf32, #tpu.memory_space<vmem>>, vector<4x256xf32>
    tpu.vector_store %arg7[%c8_15, %c512_16], %12 {strides = array<i32>} : memref<16x896xf32, #tpu.memory_space<vmem>>, vector<4x256xf32>,
    %14 = tpu.iota {dimensions = array<i32: 1>} : vector<1x256xi32>
    %c16_i32 = arith.constant 16 : i32
    %c0_i32 = arith.constant 0 : i32
    %15 = arith.cmpi eq, %c16_i32, %c0_i32 : i32
    %c1_i32 = arith.constant 1 : i32
    %16 = arith.select %15, %c1_i32, %c16_i32 : i32
    %17 = vector.broadcast %16 : i32 to vector<1x256xi32>
    %18 = arith.remsi %14, %17 : vector<1x256xi32>
    %c0_i32_17 = arith.constant 0 : i32
    %19 = vector.broadcast %c0_i32_17 : i32 to vector<1x256xi32>
    %20 = arith.cmpi ne, %18, %19 : vector<1x256xi32>
    %c0_i32_18 = arith.constant 0 : i32
    %21 = vector.broadcast %c0_i32_18 : i32 to vector<1x256xi32>
    %22 = arith.cmpi slt, %18, %21 : vector<1x256xi32>
    %c0_i32_19 = arith.constant 0 : i32
    %23 = arith.cmpi slt, %16, %c0_i32_19 : i32
    %24 = vector.broadcast %23 : i1 to vector<1x256xi1>
    %25 = vector.broadcast %24 : vector<1x256xi1> to vector<1x256xi1>
    %26 = arith.xori %22, %25 : vector<1x256xi1>
    %27 = arith.andi %26, %20 : vector<1x256xi1>
    %28 = vector.broadcast %16 : i32 to vector<1x256xi32>
    %29 = arith.addi %18, %28 : vector<1x256xi32>
    %30 = arith.select %27, %29, %18 : vector<1x256xi1>, vector<1x256xi32>
    %c-1_i32 = arith.constant -1 : i32
    %31 = vector.broadcast %c-1_i32 : i32 to vector<1x256xi32>
    %32 = arith.addi %30, %31 : vector<1x256xi32>
    %c0_i32_20 = arith.constant 0 : i32
    %33 = vector.broadcast %c0_i32_20 : i32 to vector<1x256xi32>
    %34 = arith.cmpi sge, %32, %33 : vector<1x256xi32>
    %c-1_i32_21 = arith.constant -1 : i32
    %35 = vector.broadcast %c-1_i32_21 : i32 to vector<1x256xi32>
    %36 = arith.addi %30, %35 : vector<1x256xi32>
    %c16_i32_22 = arith.constant 16 : i32
    %37 = vector.broadcast %c16_i32_22 : i32 to vector<1x256xi32>
    %38 = arith.cmpi slt, %36, %37 : vector<1x256xi32>
    %39 = arith.andi %34, %38 : vector<1x256xi1>
    %40 = arith.extui %39 : vector<1x256xi1> to vector<1x256xi32>
    %41 = arith.sitofp %40 : vector<1x256xi32> to vector<1x256xf32>
    %c1_i32_23 = arith.constant 1 : i32
    %42 = vector.broadcast %c1_i32_23 : i32 to vector<1x256xi32>
    %43 = arith.addi %30, %42 : vector<1x256xi32>
    %c0_i32_24 = arith.constant 0 : i32
    %44 = vector.broadcast %c0_i32_24 : i32 to vector<1x256xi32>
    %45 = arith.cmpi sge, %43, %44 : vector<1x256xi32>
    %c1_i32_25 = arith.constant 1 : i32
    %46 = vector.broadcast %c1_i32_25 : i32 to vector<1x256xi32>
    %47 = arith.addi %30, %46 : vector<1x256xi32>
    %c16_i32_26 = arith.constant 16 : i32
    %48 = vector.broadcast %c16_i32_26 : i32 to vector<1x256xi32>
    %49 = arith.cmpi slt, %47, %48 : vector<1x256xi32>
    %50 = arith.andi %45, %49 : vector<1x256xi1>
    %51 = arith.extui %50 : vector<1x256xi1> to vector<1x256xi32>
    %52 = arith.sitofp %51 : vector<1x256xi32> to vector<1x256xf32>
    %c0_27 = arith.constant 0 : index
    %c111 = arith.constant 111 : index
    %53 = vector.load %arg7[%c0_27, %c111] : memref<16x896xf32, #tpu.memory_space<vmem>>, vector<16x256xf32>
    %54 = vector.broadcast %41 : vector<1x256xf32> to vector<16x256xf32>
    %55 = arith.mulf %53, %54 : vector<16x256xf32>
    %c0_28 = arith.constant 0 : index
    %c0_29 = arith.constant 0 : index
    %56 = vector.load %arg8[%c0_28, %c0_29] : memref<144x512xf32, #tpu.memory_space<vmem>>, vector<16x256xf32>
    tpu.vector_store %arg8[%c0_28, %c0_29], %55 {strides = array<i32>} : memref<144x512xf32, #tpu.memory_space<vmem>>, vector<16x256xf32>,
    %c0_30 = arith.constant 0 : index
    %c495 = arith.constant 495 : index
    %57 = vector.load %arg7[%c0_30, %c495] : memref<16x896xf32, #tpu.memory_space<vmem>>, vector<16x256xf32>
    %58 = vector.broadcast %41 : vector<1x256xf32> to vector<16x256xf32>
    %59 = arith.mulf %57, %58 : vector<16x256xf32>
    %c0_31 = arith.constant 0 : index
    %c256 = arith.constant 256 : index
    %60 = vector.load %arg8[%c0_31, %c256] : memref<144x512xf32, #tpu.memory_space<vmem>>, vector<16x256xf32>
    tpu.vector_store %arg8[%c0_31, %c256], %59 {strides = array<i32>} : memref<144x512xf32, #tpu.memory_space<vmem>>, vector<16x256xf32>,
    %c0_32 = arith.constant 0 : index
    %c112 = arith.constant 112 : index
    %61 = vector.load %arg7[%c0_32, %c112] : memref<16x896xf32, #tpu.memory_space<vmem>>, vector<16x256xf32>
    %c16 = arith.constant 16 : index
    %c0_33 = arith.constant 0 : index
    %62 = vector.load %arg8[%c16, %c0_33] : memref<144x512xf32, #tpu.memory_space<vmem>>, vector<16x256xf32>
    tpu.vector_store %arg8[%c16, %c0_33], %61 {strides = array<i32>} : memref<144x512xf32, #tpu.memory_space<vmem>>, vector<16x256xf32>,
    %c0_34 = arith.constant 0 : index
    %c496 = arith.constant 496 : index
    %63 = vector.load %arg7[%c0_34, %c496] : memref<16x896xf32, #tpu.memory_space<vmem>>, vector<16x256xf32>
    %c16_35 = arith.constant 16 : index
    %c256_36 = arith.constant 256 : index
    %64 = vector.load %arg8[%c16_35, %c256_36] : memref<144x512xf32, #tpu.memory_space<vmem>>, vector<16x256xf32>
    tpu.vector_store %arg8[%c16_35, %c256_36], %63 {strides = array<i32>} : memref<144x512xf32, #tpu.memory_space<vmem>>, vector<16x256xf32>,
    %c0_37 = arith.constant 0 : index
    %c113 = arith.constant 113 : index
    %65 = vector.load %arg7[%c0_37, %c113] : memref<16x896xf32, #tpu.memory_space<vmem>>, vector<16x256xf32>
    %66 = vector.broadcast %52 : vector<1x256xf32> to vector<16x256xf32>
    %67 = arith.mulf %65, %66 : vector<16x256xf32>
    %c32 = arith.constant 32 : index
    %c0_38 = arith.constant 0 : index
    %68 = vector.load %arg8[%c32, %c0_38] : memref<144x512xf32, #tpu.memory_space<vmem>>, vector<16x256xf32>
    tpu.vector_store %arg8[%c32, %c0_38], %67 {strides = array<i32>} : memref<144x512xf32, #tpu.memory_space<vmem>>, vector<16x256xf32>,
    %c0_39 = arith.constant 0 : index
    %c497 = arith.constant 497 : index
    %69 = vector.load %arg7[%c0_39, %c497] : memref<16x896xf32, #tpu.memory_space<vmem>>, vector<16x256xf32>
    %70 = vector.broadcast %52 : vector<1x256xf32> to vector<16x256xf32>
    %71 = arith.mulf %69, %70 : vector<16x256xf32>
    %c32_40 = arith.constant 32 : index
    %c256_41 = arith.constant 256 : index
    %72 = vector.load %arg8[%c32_40, %c256_41] : memref<144x512xf32, #tpu.memory_space<vmem>>, vector<16x256xf32>
    tpu.vector_store %arg8[%c32_40, %c256_41], %71 {strides = array<i32>} : memref<144x512xf32, #tpu.memory_space<vmem>>, vector<16x256xf32>,
    %c0_42 = arith.constant 0 : index
    %c127 = arith.constant 127 : index
    %73 = vector.load %arg7[%c0_42, %c127] : memref<16x896xf32, #tpu.memory_space<vmem>>, vector<16x256xf32>
    %74 = vector.broadcast %41 : vector<1x256xf32> to vector<16x256xf32>
    %75 = arith.mulf %73, %74 : vector<16x256xf32>
    %c48 = arith.constant 48 : index
    %c0_43 = arith.constant 0 : index
    %76 = vector.load %arg8[%c48, %c0_43] : memref<144x512xf32, #tpu.memory_space<vmem>>, vector<16x256xf32>
    tpu.vector_store %arg8[%c48, %c0_43], %75 {strides = array<i32>} : memref<144x512xf32, #tpu.memory_space<vmem>>, vector<16x256xf32>,
    %c0_44 = arith.constant 0 : index
    %c511 = arith.constant 511 : index
    %77 = vector.load %arg7[%c0_44, %c511] : memref<16x896xf32, #tpu.memory_space<vmem>>, vector<16x256xf32>
    %78 = vector.broadcast %41 : vector<1x256xf32> to vector<16x256xf32>
    %79 = arith.mulf %77, %78 : vector<16x256xf32>
    %c48_45 = arith.constant 48 : index
    %c256_46 = arith.constant 256 : index
    %80 = vector.load %arg8[%c48_45, %c256_46] : memref<144x512xf32, #tpu.memory_space<vmem>>, vector<16x256xf32>
    tpu.vector_store %arg8[%c48_45, %c256_46], %79 {strides = array<i32>} : memref<144x512xf32, #tpu.memory_space<vmem>>, vector<16x256xf32>,
    %c0_47 = arith.constant 0 : index
    %c128_48 = arith.constant 128 : index
    %81 = vector.load %arg7[%c0_47, %c128_48] : memref<16x896xf32, #tpu.memory_space<vmem>>, vector<16x256xf32>
    %c64 = arith.constant 64 : index
    %c0_49 = arith.constant 0 : index
    %82 = vector.load %arg8[%c64, %c0_49] : memref<144x512xf32, #tpu.memory_space<vmem>>, vector<16x256xf32>
    tpu.vector_store %arg8[%c64, %c0_49], %81 {strides = array<i32>} : memref<144x512xf32, #tpu.memory_space<vmem>>, vector<16x256xf32>,
    %c0_50 = arith.constant 0 : index
    %c512_51 = arith.constant 512 : index
    %83 = vector.load %arg7[%c0_50, %c512_51] : memref<16x896xf32, #tpu.memory_space<vmem>>, vector<16x256xf32>
    %c64_52 = arith.constant 64 : index
    %c256_53 = arith.constant 256 : index
    %84 = vector.load %arg8[%c64_52, %c256_53] : memref<144x512xf32, #tpu.memory_space<vmem>>, vector<16x256xf32>
    tpu.vector_store %arg8[%c64_52, %c256_53], %83 {strides = array<i32>} : memref<144x512xf32, #tpu.memory_space<vmem>>, vector<16x256xf32>,
    %c0_54 = arith.constant 0 : index
    %c129 = arith.constant 129 : index
    %85 = vector.load %arg7[%c0_54, %c129] : memref<16x896xf32, #tpu.memory_space<vmem>>, vector<16x256xf32>
    %86 = vector.broadcast %52 : vector<1x256xf32> to vector<16x256xf32>
    %87 = arith.mulf %85, %86 : vector<16x256xf32>
    %c80 = arith.constant 80 : index
    %c0_55 = arith.constant 0 : index
    %88 = vector.load %arg8[%c80, %c0_55] : memref<144x512xf32, #tpu.memory_space<vmem>>, vector<16x256xf32>
    tpu.vector_store %arg8[%c80, %c0_55], %87 {strides = array<i32>} : memref<144x512xf32, #tpu.memory_space<vmem>>, vector<16x256xf32>,
    %c0_56 = arith.constant 0 : index
    %c513 = arith.constant 513 : index
    %89 = vector.load %arg7[%c0_56, %c513] : memref<16x896xf32, #tpu.memory_space<vmem>>, vector<16x256xf32>
    %90 = vector.broadcast %52 : vector<1x256xf32> to vector<16x256xf32>
    %91 = arith.mulf %89, %90 : vector<16x256xf32>
    %c80_57 = arith.constant 80 : index
    %c256_58 = arith.constant 256 : index
    %92 = vector.load %arg8[%c80_57, %c256_58] : memref<144x512xf32, #tpu.memory_space<vmem>>, vector<16x256xf32>
    tpu.vector_store %arg8[%c80_57, %c256_58], %91 {strides = array<i32>} : memref<144x512xf32, #tpu.memory_space<vmem>>, vector<16x256xf32>,
    %c0_59 = arith.constant 0 : index
    %c143 = arith.constant 143 : index
    %93 = vector.load %arg7[%c0_59, %c143] : memref<16x896xf32, #tpu.memory_space<vmem>>, vector<16x256xf32>
    %94 = vector.broadcast %41 : vector<1x256xf32> to vector<16x256xf32>
    %95 = arith.mulf %93, %94 : vector<16x256xf32>
    %c96 = arith.constant 96 : index
    %c0_60 = arith.constant 0 : index
    %96 = vector.load %arg8[%c96, %c0_60] : memref<144x512xf32, #tpu.memory_space<vmem>>, vector<16x256xf32>
    tpu.vector_store %arg8[%c96, %c0_60], %95 {strides = array<i32>} : memref<144x512xf32, #tpu.memory_space<vmem>>, vector<16x256xf32>,
    %c0_61 = arith.constant 0 : index
    %c527 = arith.constant 527 : index
    %97 = vector.load %arg7[%c0_61, %c527] : memref<16x896xf32, #tpu.memory_space<vmem>>, vector<16x256xf32>
    %98 = vector.broadcast %41 : vector<1x256xf32> to vector<16x256xf32>
    %99 = arith.mulf %97, %98 : vector<16x256xf32>
    %c96_62 = arith.constant 96 : index
    %c256_63 = arith.constant 256 : index
    %100 = vector.load %arg8[%c96_62, %c256_63] : memref<144x512xf32, #tpu.memory_space<vmem>>, vector<16x256xf32>
    tpu.vector_store %arg8[%c96_62, %c256_63], %99 {strides = array<i32>} : memref<144x512xf32, #tpu.memory_space<vmem>>, vector<16x256xf32>,
    %c0_64 = arith.constant 0 : index
    %c144 = arith.constant 144 : index
    %101 = vector.load %arg7[%c0_64, %c144] : memref<16x896xf32, #tpu.memory_space<vmem>>, vector<16x256xf32>
    %c112_65 = arith.constant 112 : index
    %c0_66 = arith.constant 0 : index
    %102 = vector.load %arg8[%c112_65, %c0_66] : memref<144x512xf32, #tpu.memory_space<vmem>>, vector<16x256xf32>
    tpu.vector_store %arg8[%c112_65, %c0_66], %101 {strides = array<i32>} : memref<144x512xf32, #tpu.memory_space<vmem>>, vector<16x256xf32>,
    %c0_67 = arith.constant 0 : index
    %c528 = arith.constant 528 : index
    %103 = vector.load %arg7[%c0_67, %c528] : memref<16x896xf32, #tpu.memory_space<vmem>>, vector<16x256xf32>
    %c112_68 = arith.constant 112 : index
    %c256_69 = arith.constant 256 : index
    %104 = vector.load %arg8[%c112_68, %c256_69] : memref<144x512xf32, #tpu.memory_space<vmem>>, vector<16x256xf32>
    tpu.vector_store %arg8[%c112_68, %c256_69], %103 {strides = array<i32>} : memref<144x512xf32, #tpu.memory_space<vmem>>, vector<16x256xf32>,
    %c0_70 = arith.constant 0 : index
    %c145 = arith.constant 145 : index
    %105 = vector.load %arg7[%c0_70, %c145] : memref<16x896xf32, #tpu.memory_space<vmem>>, vector<16x256xf32>
    %106 = vector.broadcast %52 : vector<1x256xf32> to vector<16x256xf32>
    %107 = arith.mulf %105, %106 : vector<16x256xf32>
    %c128_71 = arith.constant 128 : index
    %c0_72 = arith.constant 0 : index
    %108 = vector.load %arg8[%c128_71, %c0_72] : memref<144x512xf32, #tpu.memory_space<vmem>>, vector<16x256xf32>
    tpu.vector_store %arg8[%c128_71, %c0_72], %107 {strides = array<i32>} : memref<144x512xf32, #tpu.memory_space<vmem>>, vector<16x256xf32>,
    %c0_73 = arith.constant 0 : index
    %c529 = arith.constant 529 : index
    %109 = vector.load %arg7[%c0_73, %c529] : memref<16x896xf32, #tpu.memory_space<vmem>>, vector<16x256xf32>
    %110 = vector.broadcast %52 : vector<1x256xf32> to vector<16x256xf32>
    %111 = arith.mulf %109, %110 : vector<16x256xf32>
    %c128_74 = arith.constant 128 : index
    %c256_75 = arith.constant 256 : index
    %112 = vector.load %arg8[%c128_74, %c256_75] : memref<144x512xf32, #tpu.memory_space<vmem>>, vector<16x256xf32>
    tpu.vector_store %arg8[%c128_74, %c256_75], %111 {strides = array<i32>} : memref<144x512xf32, #tpu.memory_space<vmem>>, vector<16x256xf32>,
    %c0_76 = arith.constant 0 : index
    %c0_77 = arith.constant 0 : index
    %113 = vector.load %arg3[%c0_76, %c0_77] : memref<24x144xf32, #tpu.memory_space<vmem>>, vector<24x144xf32>
    %c0_78 = arith.constant 0 : index
    %c0_79 = arith.constant 0 : index
    %114 = vector.load %arg8[%c0_78, %c0_79] : memref<144x512xf32, #tpu.memory_space<vmem>>, vector<144x512xf32>
    %cst_80 = arith.constant dense<0.000000e+00> : vector<24x512xf32>
    %115 = tpu.matmul %113, %114, %cst_80 {dimension_numbers = #tpu.dot_dimension_numbers<[1], [0], [0], [1], [0, 0, 1, 1], [], []>} : vector<24x144xf32>, vector<144x512xf32>, vector<24x512xf32> -> vector<24x512xf32>
    %c0_81 = arith.constant 0 : index
    %c0_82 = arith.constant 0 : index
    %116 = vector.load %arg5[%c0_81, %c0_82] : memref<24x1xf32, #tpu.memory_space<vmem>>, vector<24x1xf32>
    %117 = vector.broadcast %116 : vector<24x1xf32> to vector<24x512xf32>
    %118 = arith.addf %115, %117 : vector<24x512xf32>
    %119 = vector.extract_strided_slice %118 {offsets = [0, 0], sizes = [8, 512], strides = [1, 1]} : vector<24x512xf32> to vector<8x512xf32>
    %120 = arith.negf %119 : vector<8x512xf32>
    %121 = math.exp %120 : vector<8x512xf32>
    %cst_83 = arith.constant 1.000000e+00 : f32
    %122 = vector.broadcast %cst_83 : f32 to vector<8x512xf32>
    %123 = arith.addf %122, %121 : vector<8x512xf32>
    %124 = arith.divf %122, %123 : vector<8x512xf32>
    %125 = vector.extract_strided_slice %118 {offsets = [8, 0], sizes = [8, 512], strides = [1, 1]} : vector<24x512xf32> to vector<8x512xf32>
    %126 = arith.negf %125 : vector<8x512xf32>
    %127 = math.exp %126 : vector<8x512xf32>
    %cst_84 = arith.constant 1.000000e+00 : f32
    %128 = vector.broadcast %cst_84 : f32 to vector<8x512xf32>
    %129 = arith.addf %128, %127 : vector<8x512xf32>
    %130 = arith.divf %128, %129 : vector<8x512xf32>
    %131 = vector.extract_strided_slice %118 {offsets = [16, 0], sizes = [8, 512], strides = [1, 1]} : vector<24x512xf32> to vector<8x512xf32>
    %c0_85 = arith.constant 0 : index
    %c0_86 = arith.constant 0 : index
    %c0_87 = arith.constant 0 : index
    %132 = vector.load %arg2[%c0_85, %c0_86, %c0_87] : memref<2x8x256xf32, #tpu.memory_space<vmem>>, vector<1x8x256xf32>
    %133 = vector.shape_cast %132 : vector<1x8x256xf32> to vector<8x256xf32>
    %134 = vector.extract_strided_slice %124 {offsets = [0, 0], sizes = [8, 256], strides = [1, 1]} : vector<8x512xf32> to vector<8x256xf32>
    %135 = arith.mulf %133, %134 : vector<8x256xf32>
    %c0_88 = arith.constant 0 : index
    %c128_89 = arith.constant 128 : index
    %136 = vector.load %arg7[%c0_88, %c128_89] : memref<16x896xf32, #tpu.memory_space<vmem>>, vector<8x256xf32>
    tpu.vector_store %arg7[%c0_88, %c128_89], %135 {strides = array<i32>} : memref<16x896xf32, #tpu.memory_space<vmem>>, vector<8x256xf32>,
    %c1_90 = arith.constant 1 : index
    %c0_91 = arith.constant 0 : index
    %c0_92 = arith.constant 0 : index
    %137 = vector.load %arg2[%c1_90, %c0_91, %c0_92] : memref<2x8x256xf32, #tpu.memory_space<vmem>>, vector<1x8x256xf32>
    %138 = vector.shape_cast %137 : vector<1x8x256xf32> to vector<8x256xf32>
    %139 = vector.extract_strided_slice %124 {offsets = [0, 256], sizes = [8, 256], strides = [1, 1]} : vector<8x512xf32> to vector<8x256xf32>
    %140 = arith.mulf %138, %139 : vector<8x256xf32>
    %c0_93 = arith.constant 0 : index
    %c512_94 = arith.constant 512 : index
    %141 = vector.load %arg7[%c0_93, %c512_94] : memref<16x896xf32, #tpu.memory_space<vmem>>, vector<8x256xf32>
    tpu.vector_store %arg7[%c0_93, %c512_94], %140 {strides = array<i32>} : memref<16x896xf32, #tpu.memory_space<vmem>>, vector<8x256xf32>,
    %c0_95 = arith.constant 0 : index
    %c111_96 = arith.constant 111 : index
    %142 = vector.load %arg7[%c0_95, %c111_96] : memref<16x896xf32, #tpu.memory_space<vmem>>, vector<8x256xf32>
    %143 = vector.broadcast %41 : vector<1x256xf32> to vector<8x256xf32>
    %144 = arith.mulf %142, %143 : vector<8x256xf32>
    %c0_97 = arith.constant 0 : index
    %c0_98 = arith.constant 0 : index
    %145 = vector.load %arg9[%c0_97, %c0_98] : memref<72x512xf32, #tpu.memory_space<vmem>>, vector<8x256xf32>
    tpu.vector_store %arg9[%c0_97, %c0_98], %144 {strides = array<i32>} : memref<72x512xf32, #tpu.memory_space<vmem>>, vector<8x256xf32>,
    %c0_99 = arith.constant 0 : index
    %c495_100 = arith.constant 495 : index
    %146 = vector.load %arg7[%c0_99, %c495_100] : memref<16x896xf32, #tpu.memory_space<vmem>>, vector<8x256xf32>
    %147 = vector.broadcast %41 : vector<1x256xf32> to vector<8x256xf32>
    %148 = arith.mulf %146, %147 : vector<8x256xf32>
    %c0_101 = arith.constant 0 : index
    %c256_102 = arith.constant 256 : index
    %149 = vector.load %arg9[%c0_101, %c256_102] : memref<72x512xf32, #tpu.memory_space<vmem>>, vector<8x256xf32>
    tpu.vector_store %arg9[%c0_101, %c256_102], %148 {strides = array<i32>} : memref<72x512xf32, #tpu.memory_space<vmem>>, vector<8x256xf32>,
    %c0_103 = arith.constant 0 : index
    %c112_104 = arith.constant 112 : index
    %150 = vector.load %arg7[%c0_103, %c112_104] : memref<16x896xf32, #tpu.memory_space<vmem>>, vector<8x256xf32>
    %c8_105 = arith.constant 8 : index
    %c0_106 = arith.constant 0 : index
    %151 = vector.load %arg9[%c8_105, %c0_106] : memref<72x512xf32, #tpu.memory_space<vmem>>, vector<8x256xf32>
    tpu.vector_store %arg9[%c8_105, %c0_106], %150 {strides = array<i32>} : memref<72x512xf32, #tpu.memory_space<vmem>>, vector<8x256xf32>,
    %c0_107 = arith.constant 0 : index
    %c496_108 = arith.constant 496 : index
    %152 = vector.load %arg7[%c0_107, %c496_108] : memref<16x896xf32, #tpu.memory_space<vmem>>, vector<8x256xf32>
    %c8_109 = arith.constant 8 : index
    %c256_110 = arith.constant 256 : index
    %153 = vector.load %arg9[%c8_109, %c256_110] : memref<72x512xf32, #tpu.memory_space<vmem>>, vector<8x256xf32>
    tpu.vector_store %arg9[%c8_109, %c256_110], %152 {strides = array<i32>} : memref<72x512xf32, #tpu.memory_space<vmem>>, vector<8x256xf32>,
    %c0_111 = arith.constant 0 : index
    %c113_112 = arith.constant 113 : index
    %154 = vector.load %arg7[%c0_111, %c113_112] : memref<16x896xf32, #tpu.memory_space<vmem>>, vector<8x256xf32>
    %155 = vector.broadcast %52 : vector<1x256xf32> to vector<8x256xf32>
    %156 = arith.mulf %154, %155 : vector<8x256xf32>
    %c16_113 = arith.constant 16 : index
    %c0_114 = arith.constant 0 : index
    %157 = vector.load %arg9[%c16_113, %c0_114] : memref<72x512xf32, #tpu.memory_space<vmem>>, vector<8x256xf32>
    tpu.vector_store %arg9[%c16_113, %c0_114], %156 {strides = array<i32>} : memref<72x512xf32, #tpu.memory_space<vmem>>, vector<8x256xf32>,
    %c0_115 = arith.constant 0 : index
    %c497_116 = arith.constant 497 : index
    %158 = vector.load %arg7[%c0_115, %c497_116] : memref<16x896xf32, #tpu.memory_space<vmem>>, vector<8x256xf32>
    %159 = vector.broadcast %52 : vector<1x256xf32> to vector<8x256xf32>
    %160 = arith.mulf %158, %159 : vector<8x256xf32>
    %c16_117 = arith.constant 16 : index
    %c256_118 = arith.constant 256 : index
    %161 = vector.load %arg9[%c16_117, %c256_118] : memref<72x512xf32, #tpu.memory_space<vmem>>, vector<8x256xf32>
    tpu.vector_store %arg9[%c16_117, %c256_118], %160 {strides = array<i32>} : memref<72x512xf32, #tpu.memory_space<vmem>>, vector<8x256xf32>,
    %c0_119 = arith.constant 0 : index
    %c127_120 = arith.constant 127 : index
    %162 = vector.load %arg7[%c0_119, %c127_120] : memref<16x896xf32, #tpu.memory_space<vmem>>, vector<8x256xf32>
    %163 = vector.broadcast %41 : vector<1x256xf32> to vector<8x256xf32>
    %164 = arith.mulf %162, %163 : vector<8x256xf32>
    %c24 = arith.constant 24 : index
    %c0_121 = arith.constant 0 : index
    %165 = vector.load %arg9[%c24, %c0_121] : memref<72x512xf32, #tpu.memory_space<vmem>>, vector<8x256xf32>
    tpu.vector_store %arg9[%c24, %c0_121], %164 {strides = array<i32>} : memref<72x512xf32, #tpu.memory_space<vmem>>, vector<8x256xf32>,
    %c0_122 = arith.constant 0 : index
    %c511_123 = arith.constant 511 : index
    %166 = vector.load %arg7[%c0_122, %c511_123] : memref<16x896xf32, #tpu.memory_space<vmem>>, vector<8x256xf32>
    %167 = vector.broadcast %41 : vector<1x256xf32> to vector<8x256xf32>
    %168 = arith.mulf %166, %167 : vector<8x256xf32>
    %c24_124 = arith.constant 24 : index
    %c256_125 = arith.constant 256 : index
    %169 = vector.load %arg9[%c24_124, %c256_125] : memref<72x512xf32, #tpu.memory_space<vmem>>, vector<8x256xf32>
    tpu.vector_store %arg9[%c24_124, %c256_125], %168 {strides = array<i32>} : memref<72x512xf32, #tpu.memory_space<vmem>>, vector<8x256xf32>,
    %c0_126 = arith.constant 0 : index
    %c128_127 = arith.constant 128 : index
    %170 = vector.load %arg7[%c0_126, %c128_127] : memref<16x896xf32, #tpu.memory_space<vmem>>, vector<8x256xf32>
    %c32_128 = arith.constant 32 : index
    %c0_129 = arith.constant 0 : index
    %171 = vector.load %arg9[%c32_128, %c0_129] : memref<72x512xf32, #tpu.memory_space<vmem>>, vector<8x256xf32>
    tpu.vector_store %arg9[%c32_128, %c0_129], %170 {strides = array<i32>} : memref<72x512xf32, #tpu.memory_space<vmem>>, vector<8x256xf32>,
    %c0_130 = arith.constant 0 : index
    %c512_131 = arith.constant 512 : index
    %172 = vector.load %arg7[%c0_130, %c512_131] : memref<16x896xf32, #tpu.memory_space<vmem>>, vector<8x256xf32>
    %c32_132 = arith.constant 32 : index
    %c256_133 = arith.constant 256 : index
    %173 = vector.load %arg9[%c32_132, %c256_133] : memref<72x512xf32, #tpu.memory_space<vmem>>, vector<8x256xf32>
    tpu.vector_store %arg9[%c32_132, %c256_133], %172 {strides = array<i32>} : memref<72x512xf32, #tpu.memory_space<vmem>>, vector<8x256xf32>,
    %c0_134 = arith.constant 0 : index
    %c129_135 = arith.constant 129 : index
    %174 = vector.load %arg7[%c0_134, %c129_135] : memref<16x896xf32, #tpu.memory_space<vmem>>, vector<8x256xf32>
    %175 = vector.broadcast %52 : vector<1x256xf32> to vector<8x256xf32>
    %176 = arith.mulf %174, %175 : vector<8x256xf32>
    %c40 = arith.constant 40 : index
    %c0_136 = arith.constant 0 : index
    %177 = vector.load %arg9[%c40, %c0_136] : memref<72x512xf32, #tpu.memory_space<vmem>>, vector<8x256xf32>
    tpu.vector_store %arg9[%c40, %c0_136], %176 {strides = array<i32>} : memref<72x512xf32, #tpu.memory_space<vmem>>, vector<8x256xf32>,
    %c0_137 = arith.constant 0 : index
    %c513_138 = arith.constant 513 : index
    %178 = vector.load %arg7[%c0_137, %c513_138] : memref<16x896xf32, #tpu.memory_space<vmem>>, vector<8x256xf32>
    %179 = vector.broadcast %52 : vector<1x256xf32> to vector<8x256xf32>
    %180 = arith.mulf %178, %179 : vector<8x256xf32>
    %c40_139 = arith.constant 40 : index
    %c256_140 = arith.constant 256 : index
    %181 = vector.load %arg9[%c40_139, %c256_140] : memref<72x512xf32, #tpu.memory_space<vmem>>, vector<8x256xf32>
    tpu.vector_store %arg9[%c40_139, %c256_140], %180 {strides = array<i32>} : memref<72x512xf32, #tpu.memory_space<vmem>>, vector<8x256xf32>,
    %c0_141 = arith.constant 0 : index
    %c143_142 = arith.constant 143 : index
    %182 = vector.load %arg7[%c0_141, %c143_142] : memref<16x896xf32, #tpu.memory_space<vmem>>, vector<8x256xf32>
    %183 = vector.broadcast %41 : vector<1x256xf32> to vector<8x256xf32>
    %184 = arith.mulf %182, %183 : vector<8x256xf32>
    %c48_143 = arith.constant 48 : index
    %c0_144 = arith.constant 0 : index
    %185 = vector.load %arg9[%c48_143, %c0_144] : memref<72x512xf32, #tpu.memory_space<vmem>>, vector<8x256xf32>
    tpu.vector_store %arg9[%c48_143, %c0_144], %184 {strides = array<i32>} : memref<72x512xf32, #tpu.memory_space<vmem>>, vector<8x256xf32>,
    %c0_145 = arith.constant 0 : index
    %c527_146 = arith.constant 527 : index
    %186 = vector.load %arg7[%c0_145, %c527_146] : memref<16x896xf32, #tpu.memory_space<vmem>>, vector<8x256xf32>
    %187 = vector.broadcast %41 : vector<1x256xf32> to vector<8x256xf32>
    %188 = arith.mulf %186, %187 : vector<8x256xf32>
    %c48_147 = arith.constant 48 : index
    %c256_148 = arith.constant 256 : index
    %189 = vector.load %arg9[%c48_147, %c256_148] : memref<72x512xf32, #tpu.memory_space<vmem>>, vector<8x256xf32>
    tpu.vector_store %arg9[%c48_147, %c256_148], %188 {strides = array<i32>} : memref<72x512xf32, #tpu.memory_space<vmem>>, vector<8x256xf32>,
    %c0_149 = arith.constant 0 : index
    %c144_150 = arith.constant 144 : index
    %190 = vector.load %arg7[%c0_149, %c144_150] : memref<16x896xf32, #tpu.memory_space<vmem>>, vector<8x256xf32>
    %c56 = arith.constant 56 : index
    %c0_151 = arith.constant 0 : index
    %191 = vector.load %arg9[%c56, %c0_151] : memref<72x512xf32, #tpu.memory_space<vmem>>, vector<8x256xf32>
    tpu.vector_store %arg9[%c56, %c0_151], %190 {strides = array<i32>} : memref<72x512xf32, #tpu.memory_space<vmem>>, vector<8x256xf32>,
    %c0_152 = arith.constant 0 : index
    %c528_153 = arith.constant 528 : index
    %192 = vector.load %arg7[%c0_152, %c528_153] : memref<16x896xf32, #tpu.memory_space<vmem>>, vector<8x256xf32>
    %c56_154 = arith.constant 56 : index
    %c256_155 = arith.constant 256 : index
    %193 = vector.load %arg9[%c56_154, %c256_155] : memref<72x512xf32, #tpu.memory_space<vmem>>, vector<8x256xf32>
    tpu.vector_store %arg9[%c56_154, %c256_155], %192 {strides = array<i32>} : memref<72x512xf32, #tpu.memory_space<vmem>>, vector<8x256xf32>,
    %c0_156 = arith.constant 0 : index
    %c145_157 = arith.constant 145 : index
    %194 = vector.load %arg7[%c0_156, %c145_157] : memref<16x896xf32, #tpu.memory_space<vmem>>, vector<8x256xf32>
    %195 = vector.broadcast %52 : vector<1x256xf32> to vector<8x256xf32>
    %196 = arith.mulf %194, %195 : vector<8x256xf32>
    %c64_158 = arith.constant 64 : index
    %c0_159 = arith.constant 0 : index
    %197 = vector.load %arg9[%c64_158, %c0_159] : memref<72x512xf32, #tpu.memory_space<vmem>>, vector<8x256xf32>
    tpu.vector_store %arg9[%c64_158, %c0_159], %196 {strides = array<i32>} : memref<72x512xf32, #tpu.memory_space<vmem>>, vector<8x256xf32>,
    %c0_160 = arith.constant 0 : index
    %c529_161 = arith.constant 529 : index
    %198 = vector.load %arg7[%c0_160, %c529_161] : memref<16x896xf32, #tpu.memory_space<vmem>>, vector<8x256xf32>
    %199 = vector.broadcast %52 : vector<1x256xf32> to vector<8x256xf32>
    %200 = arith.mulf %198, %199 : vector<8x256xf32>
    %c64_162 = arith.constant 64 : index
    %c256_163 = arith.constant 256 : index
    %201 = vector.load %arg9[%c64_162, %c256_163] : memref<72x512xf32, #tpu.memory_space<vmem>>, vector<8x256xf32>
    tpu.vector_store %arg9[%c64_162, %c256_163], %200 {strides = array<i32>} : memref<72x512xf32, #tpu.memory_space<vmem>>, vector<8x256xf32>,
    %c0_164 = arith.constant 0 : index
    %c0_165 = arith.constant 0 : index
    %202 = vector.load %arg4[%c0_164, %c0_165] : memref<8x72xf32, #tpu.memory_space<vmem>>, vector<8x72xf32>
    %c0_166 = arith.constant 0 : index
    %c0_167 = arith.constant 0 : index
    %203 = vector.load %arg9[%c0_166, %c0_167] : memref<72x512xf32, #tpu.memory_space<vmem>>, vector<72x512xf32>
    %cst_168 = arith.constant dense<0.000000e+00> : vector<8x512xf32>
    %204 = tpu.matmul %202, %203, %cst_168 {dimension_numbers = #tpu.dot_dimension_numbers<[1], [0], [0], [1], [0, 0, 1, 1], [], []>} : vector<8x72xf32>, vector<72x512xf32>, vector<8x512xf32> -> vector<8x512xf32>
    %205 = arith.addf %204, %131 : vector<8x512xf32>
    %206 = math.tanh %205 : vector<8x512xf32>
    %207 = vector.extract_strided_slice %130 {offsets = [0, 0], sizes = [8, 256], strides = [1, 1]} : vector<8x512xf32> to vector<8x256xf32>
    %208 = vector.extract_strided_slice %206 {offsets = [0, 0], sizes = [8, 256], strides = [1, 1]} : vector<8x512xf32> to vector<8x256xf32>
    %c0_169 = arith.constant 0 : index
    %c0_170 = arith.constant 0 : index
    %c0_171 = arith.constant 0 : index
    %209 = vector.load %arg2[%c0_169, %c0_170, %c0_171] : memref<2x8x256xf32, #tpu.memory_space<vmem>>, vector<1x8x256xf32>
    %210 = vector.shape_cast %209 : vector<1x8x256xf32> to vector<8x256xf32>
    %cst_172 = arith.constant 1.000000e+00 : f32
    %211 = vector.broadcast %cst_172 : f32 to vector<8x256xf32>
    %212 = arith.subf %211, %207 : vector<8x256xf32>
    %213 = arith.mulf %210, %212 : vector<8x256xf32>
    %214 = arith.mulf %208, %207 : vector<8x256xf32>
    %215 = arith.addf %213, %214 : vector<8x256xf32>
    %c0_173 = arith.constant 0 : index
    %c0_174 = arith.constant 0 : index
    %c0_175 = arith.constant 0 : index
    %216 = vector.load %arg6[%c0_173, %c0_174, %c0_175] : memref<2x8x256xf32, #tpu.memory_space<vmem>>, vector<1x8x256xf32>
    %217 = vector.shape_cast %216 : vector<1x8x256xf32> to vector<8x256xf32>
    %218 = vector.shape_cast %215 : vector<8x256xf32> to vector<1x8x256xf32>
    tpu.vector_store %arg6[%c0_173, %c0_174, %c0_175], %218 {strides = array<i32>} : memref<2x8x256xf32, #tpu.memory_space<vmem>>, vector<1x8x256xf32>,
    %219 = vector.extract_strided_slice %130 {offsets = [0, 256], sizes = [8, 256], strides = [1, 1]} : vector<8x512xf32> to vector<8x256xf32>
    %220 = vector.extract_strided_slice %206 {offsets = [0, 256], sizes = [8, 256], strides = [1, 1]} : vector<8x512xf32> to vector<8x256xf32>
    %c1_176 = arith.constant 1 : index
    %c0_177 = arith.constant 0 : index
    %c0_178 = arith.constant 0 : index
    %221 = vector.load %arg2[%c1_176, %c0_177, %c0_178] : memref<2x8x256xf32, #tpu.memory_space<vmem>>, vector<1x8x256xf32>
    %222 = vector.shape_cast %221 : vector<1x8x256xf32> to vector<8x256xf32>
    %cst_179 = arith.constant 1.000000e+00 : f32
    %223 = vector.broadcast %cst_179 : f32 to vector<8x256xf32>
    %224 = arith.subf %223, %219 : vector<8x256xf32>
    %225 = arith.mulf %222, %224 : vector<8x256xf32>
    %226 = arith.mulf %220, %219 : vector<8x256xf32>
    %227 = arith.addf %225, %226 : vector<8x256xf32>
    %c1_180 = arith.constant 1 : index
    %c0_181 = arith.constant 0 : index
    %c0_182 = arith.constant 0 : index
    %228 = vector.load %arg6[%c1_180, %c0_181, %c0_182] : memref<2x8x256xf32, #tpu.memory_space<vmem>>, vector<1x8x256xf32>
    %229 = vector.shape_cast %228 : vector<1x8x256xf32> to vector<8x256xf32>
    %230 = vector.shape_cast %227 : vector<8x256xf32> to vector<1x8x256xf32>
    tpu.vector_store %arg6[%c1_180, %c0_181, %c0_182], %230 {strides = array<i32>} : memref<2x8x256xf32, #tpu.memory_space<vmem>>, vector<1x8x256xf32>,
    return
  }
  func.func @transform_0(%arg0: i32) -> (i32, i32, i32) {
    %c0_i32 = arith.constant 0 : i32
    %c0_i32_0 = arith.constant 0 : i32
    %c0_i32_1 = arith.constant 0 : i32
    return %arg0, %c0_i32, %c0_i32_0 : i32, i32, i32
  }
  func.func @transform_1(%arg0: i32) -> (i32, i32, i32) {
    %c0_i32 = arith.constant 0 : i32
    %c0_i32_0 = arith.constant 0 : i32
    %c0_i32_1 = arith.constant 0 : i32
    return %arg0, %c0_i32, %c0_i32_0 : i32, i32, i32
  }
  func.func @transform_2(%arg0: i32) -> (i32, i32) {
    %c0_i32 = arith.constant 0 : i32
    %c0_i32_0 = arith.constant 0 : i32
    %c0_i32_1 = arith.constant 0 : i32
    return %c0_i32, %c0_i32_0 : i32, i32
  }
  func.func @transform_3(%arg0: i32) -> (i32, i32) {
    %c0_i32 = arith.constant 0 : i32
    %c0_i32_0 = arith.constant 0 : i32
    %c0_i32_1 = arith.constant 0 : i32
    return %c0_i32, %c0_i32_0 : i32, i32
  }
  func.func @transform_4(%arg0: i32) -> (i32, i32) {
    %c0_i32 = arith.constant 0 : i32
    %c0_i32_0 = arith.constant 0 : i32
    %c0_i32_1 = arith.constant 0 : i32
    return %c0_i32, %c0_i32_0 : i32, i32
  }
  func.func @transform_5(%arg0: i32) -> (i32, i32, i32) {
    %c0_i32 = arith.constant 0 : i32
    %c0_i32_0 = arith.constant 0 : i32
    %c0_i32_1 = arith.constant 0 : i32
    return %arg0, %c0_i32, %c0_i32_0 : i32, i32, i32
  }
}

</mosaic_0001>

<bundles_post_ra>
// kernel: tpu_custom_call.1
= control target key start
LH: loop header
LB: loop body
LE: loop exit
PB: predicated region body
PF: predicated region fallthrough
CT: control target
= control target key end

     0   :  { %10 = vsyncpa [#allocation6], 0  ;;  %s3292_s0 = inlined_call_operand.vmem [shape: f32[2,4,256], index: 0, kind: input, shape index: {}]   ;;  %s3293_s1 = inlined_call_operand.hbm [shape: f32[2,8,256], index: 1, kind: input, shape index: {}]   ;;  %s3294_s2 = inlined_call_operand.hbm [shape: f32[24,144], index: 2, kind: input, shape index: {}]   ;;  %s3295_s3 = inlined_call_operand.vmem [shape: f32[8,72], index: 3, kind: input, shape index: {}]   ;;  %s3296_s4 = inlined_call_operand.vmem [shape: f32[24,1], index: 4, kind: input, shape index: {}]   ;;  %s3297_s5 = inlined_call_operand.hbm [shape: f32[2,8,256], index: 5, kind: output, shape index: {}]  }
   0x1   :  { %11 = vsyncpa [#allocation9], 0 }
   0x2   :  { %12 = vsyncpa [#allocation7], 0  ;;  %s19_s20 = sshll.u32 %s3293_s1, 4  ;;  %s2383_s21 = smov [#allocation5]   ;;  %s20_s20 = int_to_ptr.hbm [resolvable:$true] %s19_s20 }
   0x3   :  { %s21_s22 = sshll.u32 %s2383_s21, 4  ;;  %s32_s25 = sshll.u32 %s3294_s2, 4  ;;  %s22_s22 = int_to_ptr.vmem [resolvable:$true] %s21_s22  ;;  %s33_s25 = int_to_ptr.hbm [resolvable:$true] %s32_s25 }
   0x4   :  { %s2384_s26 = smov 256   ;;  %s2385_s27 = smov 16  }
   0x5   :  { %27 = dma.hbm_to_vmem [thread:$0]  %s20_s20, 512, %s22_s22, [#allocation6], %s2384_s26, %s2384_s26, %s2385_s27  }
   0x6   :  { %s2386_s28 = smov [#allocation8]  }
   0x7   :  { %s34_s29 = sshll.u32 %s2386_s28, 4  ;;  %s35_s29 = int_to_ptr.vmem [resolvable:$true] %s34_s29 }
   0x8   :  { %40 = dma.hbm_to_vmem [thread:$0]  %s33_s25, 768, %s35_s29, [#allocation9], %s2384_s26, %s2384_s26, %s2385_s27  }
   0x9   :  { %2377 = dma.done.wait [#allocation6], 512  }
   0xa   :  { %2378 = vsyncadd [#allocation6], 4294966784  ;;  %v95_v0 = vlaneseq }
   0xb   :  { %2379 = dma.done.wait [#allocation9], 768  }
   0xc   :  { %2380 = vsyncadd [#allocation9], 4294966528  ;;  %v2387_v1 = vmov 0.0   ;;  %v96_v2 = vand.u32 127, %v95_v0  ;;  %v71_v11 = vld [vmem:[%s3292_s0] sm:$0xff]  ;;  %v2448_v12 = vld [vmem:[#allocation5 + $0x18] sm:$0xff] }
   0xd   :  { %53 = vst [vmem:[#allocation2 + $0x30] sm:$0xff] %v2387_v1  ;;  %v2452_v15 = vld [vmem:[#allocation5 + $0x10] sm:$0xff]  ;;  %s2388_s30 = smov 1   ;;  %s2389_s6 = smov 17   ;;  %v2466_v22 = vld [vmem:[#allocation5] sm:$0xff]  ;;  %v2468_v23 = vld [vmem:[#allocation5 + $0x8] sm:$0xff] }
   0xe   :  { %v97_v3 = vadd.s32 128, %v96_v2  ;;  %v102_v4 = vand.u32 15, %v96_v2  ;;  %61 = vst [vmem:[#allocation2 + $0x40] sm:$0xff] %v2387_v1  ;;  %s2390_s7 = smov 113   ;;  %v1849_v19 = vld [vmem:[%s3292_s0 + $0x8] sm:$0xff]  ;;  %s2391_s10 = smov 15   ;;  %v1927_v24 = vpack.i.bf16 %v2468_v23, %v2466_v22  ;;  %v1947_v33 = vpack.i.bf16 %v2466_v22, %v2387_v1 }
   0xf   :  { %62 = vst [vmem:[#allocation2 + $0x20] sm:$0xff] %v2387_v1  ;;  %s2392_s11 = smov 127   ;;  %s2393_s12 = smov 111   ;;  %v1932_v25 = vpack.i.bf16 0.0, %v2448_v12  ;;  %vm187_vm4 = vcmask 138240   ;;  %vm356_vm5 = vcmask 121856  }
  0x10   :  { %v109_v5 = vand.u32 15, %v97_v3  ;;  %v134_v6 = vadd.s32 1, %v102_v4  ;;  %v122_v8 = vadd.s32 4294967295, %v102_v4  ;;  %64 = vst [vmem:[#allocation2 + $0x38] sm:$0xff] %v2387_v1  ;;  %s2394_s0 = smov 112   ;;  %vm421_vm6 = vcmask 1039360  }
  0x11   :  { %65 = vst [vmem:[#allocation2 + $0x60] sm:$0xff] %v2387_v1  ;;  %vm450_vm7 = vcmask 7168   ;;  %vm327_vm8 = vcmask 924672   ;;  %vm158_vm9 = vcmask 908288   ;;  %vm729_vm10 = vcmask 916480   ;;  %s1835_s23 = sshll.u32 %s3297_s5, 4  ;;  %s1836_s23 = int_to_ptr.hbm [resolvable:$true] %s1835_s23 }
  0x12   :  { %v135_v7 = vadd.s32 1, %v109_v5  ;;  %vm138_vm0 = vcmp.lt.s32.totalorder %v134_v6, 16  ;;  %v123_v9 = vadd.s32 4294967295, %v109_v5  ;;  %84 = vst [vmem:[#allocation2 + $0x68] sm:$0xff] %v2448_v12  ;;  %vm124_vm2 = vcmp.ge.s32.totalorder %v122_v8, 0 }
  0x13   :  { %v1852_v10 = vsel %vm138_vm0, 1.0, %v2387_v1  ;;  %73 = vst [vmem:[#allocation1] ss:$2 sm:$0xff] %v71_v11  ;;  %v1850_v16 = vsel %vm124_vm2, 1.0, %v2387_v1  ;;  %vm266_vm11 = vcmask 130048  }
  0x14   :  { %vm139_vm1 = vcmp.lt.s32.totalorder %v135_v7, 16  ;;  %vm125_vm3 = vcmp.ge.s32.totalorder %v123_v9, 0  ;;  %83 = vst [vmem:[#allocation2 + $0x50] sm:$0xff] %v2452_v15 }
  0x15   :  { %v1853_v13 = vsel %vm139_vm1, 1.0, %v2387_v1  ;;  %v1851_v17 = vsel %vm125_vm3, 1.0, %v2387_v1 }
  0x16   :  { %v1902_v14 = vpack.i.bf16 %v1853_v13, %v1852_v10  ;;  %v1897_v18 = vpack.i.bf16 %v1851_v17, %v1850_v16 }
  0x18   :  { %1903 = vrot.lane.b32.xlu1 %v1902_v14, %s2388_s30  ;;  %1893 = vrot.lane.b32.xlu0 %v1902_v14, %s2389_s6 }
  0x19   :  { %1918 = vrot.lane.b32.xlu2 %v1902_v14, %s2390_s7 }
  0x1a   :  { %v74_v20 = vld.sshfl [vmem:[#allocation1] sm:$0xff pattern:$0x75316420]  ;;  %v75_v21 = vld.sshfl [vmem:[#allocation1 + $0x8] sm:$0xff pattern:$0x75316420] }
  0x1b   :  { %78 = vst [vmem:[#allocation2 + $0x40] sm:$0xf] %v74_v20 }
  0x1c   :  { %79 = vst [vmem:[#allocation2 + $0x20] sm:$0xf] %v75_v21 }
  0x1d   :  { %88 = vst [vmem:[#allocation1] ss:$2 sm:$0xff] %v1849_v19 }
  0x20   :  { %1898 = vrot.lane.b32.xlu0 %v1897_v18, %s2391_s10  ;;  %1908 = vrot.lane.b32.xlu1 %v1897_v18, %s2392_s11 }
  0x21   :  { %1923 = vrot.lane.b32.xlu2 %v1897_v18, %s2393_s12 }
  0x22   :  { %v2477_v27 = vld [vmem:[#allocation2 + $0x40] sm:$0xff] }
  0x23   :  { %v2479_v28 = vld [vmem:[#allocation2 + $0x20] sm:$0xff]  ;;  %v1942_v29 = vpack.i.bf16 %v2477_v27, %v2387_v1 }
  0x24   :  { %v89_v26 = vld.sshfl [vmem:[#allocation1] sm:$0xff pattern:$0x75316420]  ;;  %v1952_v30 = vpack.i.bf16 %v2468_v23, %v2479_v28  ;;  %v1937_v31 = vpack.i.bf16 %v2479_v28, %v2477_v27  ;;  %v90_v35 = vld.sshfl [vmem:[#allocation1 + $0x8] sm:$0xff pattern:$0x75316420] }
  0x25   :  { %93 = vst [vmem:[#allocation2 + $0x38] sm:$0xf] %v89_v26 }
  0x26   :  { %94 = vst [vmem:[#allocation2 + $0x60] sm:$0xf] %v90_v35 }
  0x28   :  { %1913 = vrot.lane.b32.xlu1 %v2387_v1, %s2394_s0  ;;  %1928 = vrot.lane.b32.xlu0 %v1927_v24, %s2394_s0 }
  0x29   :  { %1933 = vrot.lane.b32.xlu2 %v1932_v25, %s2394_s0 }
  0x2c   :  { %v2490_v32 = vld [vmem:[#allocation2 + $0x38] sm:$0xff] }
  0x2d   :  { %v1962_v34 = vpack.i.bf16 %v2452_v15, %v2490_v32  ;;  %v2498_v36 = vld [vmem:[#allocation2 + $0x60] sm:$0xff] }
  0x2e   :  { %v1957_v37 = vpack.i.bf16 0.0, %v2498_v36 }
  0x30   :  { %1943 = vrot.lane.b32.xlu1 %v1942_v29, %s2385_s27  ;;  %1953 = vrot.lane.b32.xlu0 %v1952_v30, %s2385_s27 }
  0x31   :  { %1938 = vrot.lane.b32.xlu2 %v1937_v31, %s2394_s0 }
  0x38   :  { %1948 = vrot.lane.b32.xlu1 %v1947_v33, %s2385_s27  ;;  %1958 = vrot.lane.b32.xlu0 %v1957_v37, %s2394_s0 }
  0x39   :  { %1963 = vrot.lane.b32.xlu2 %v1962_v34, %s2394_s0 }
  0x73   :  { %v1919_v0 = vpop.permute.xlu2 %1918 }
  0x74   :  { %v2559_v9 = vunpack.i.h.bf16 %v1919_v0 }
  0x76   :  { %v334_v16 = vmul.f32 %v2559_v9, %v2468_v23  ;;  %v337_v17 = vmul.f32 %v2559_v9, %v2479_v28 }
  0x78   :  { %v1997_v26 = vpack.i.bf16 %v334_v16, %v337_v17 }
  0x7b   :  { %v1924_v18 = vpop.permute.xlu2 %1923 }
  0x7c   :  { %v2580_v25 = vunpack.i.h.bf16 %v1924_v18 }
  0x7e   :  { %v165_v33 = vmul.f32 %v2580_v25, %v2468_v23  ;;  %v168_v34 = vmul.f32 %v2580_v25, %v2479_v28 }
  0x8a   :  { %v1904_v38 = vpop.permute.xlu1 %1903  ;;  %v1894_v39 = vpop.permute.xlu0 %1893 }
  0x8b   :  { %v2502_v40 = vunpack.i.l.bf16 %v1904_v38  ;;  %v2504_v41 = vunpack.i.l.bf16 %v1894_v39  ;;  %v2506_v42 = vunpack.i.h.bf16 %v1904_v38  ;;  %v1896_v43 = vunpack.i.h.bf16 %v1894_v39 }
  0x8c   :  { %v2002_v39 = vpack.i.bf16 %v165_v33, %v168_v34 }
  0x8d   :  { %v577_v44 = vmul.f32 %v2502_v40, %v2452_v15  ;;  %v580_v45 = vmul.f32 %v2502_v40, %v2490_v32  ;;  %v792_v46 = vmul.f32 %v2504_v41, %v2466_v22  ;;  %v795_v47 = vmul.f32 %v2504_v41, %v2477_v27 }
  0x8e   :  { %v2517_v50 = vmul.f32 0.0, %v2506_v42  ;;  %v2523_v51 = vsel %vm187_vm4, %v2504_v41, %v1896_v43  ;;  %v2531_v57 = vmul.f32 0.0, %v1896_v43  ;;  %v2586_v31 = vsel %vm450_vm7, %v2502_v40, %v2506_v42 }
  0x8f   :  { %v1977_v48 = vpack.i.bf16 %v577_v44, %v580_v45  ;;  %v1972_v49 = vpack.i.bf16 %v792_v46, %v795_v47  ;;  %v793_v56 = vmul.f32 %v2523_v51, %v2468_v23  ;;  %v535_v37 = vmul.f32 %v2502_v40, %v2466_v22 }
  0x90   :  { %v1987_v55 = vpack.i.bf16 %v2517_v50, %v2517_v50  ;;  %v536_v38 = vmul.f32 %v2586_v31, %v2468_v23  ;;  %v796_v45 = vmul.f32 %v2523_v51, %v2479_v28  ;;  %v837_v46 = vmul.f32 %v2504_v41, %v2490_v32 }
  0x91   :  { %1978 = vrot.lane.b32.xlu2 %v1977_v48, %s2392_s11  ;;  %1973 = vrot.lane.b32.xlu1 %v1972_v49, %s2393_s12  ;;  %v2012_v63 = vpack.i.bf16 %v2531_v57, %v793_v56  ;;  %v838_v47 = vmul.f32 %v2523_v51, %v2498_v36  ;;  %v539_v56 = vmul.f32 %v2479_v28, %v2586_v31 }
  0x92   :  { %v1899_v52 = vpop.permute.xlu0 %1898  ;;  %v1909_v53 = vpop.permute.xlu1 %1908  ;;  %v2032_v44 = vpack.i.bf16 %v536_v38, %v535_v37  ;;  %v2007_v49 = vpack.i.bf16 %v2531_v57, %v796_v45 }
  0x93   :  { %v2525_v54 = vunpack.i.l.bf16 %v1899_v52  ;;  %v2533_v58 = vunpack.i.h.bf16 %v1899_v52  ;;  %v2539_v61 = vunpack.i.h.bf16 %v1909_v53  ;;  %v1910_v5 = vunpack.i.l.bf16 %v1909_v53 }
  0x94   :  { %v2057_v52 = vpack.i.bf16 %v838_v47, %v837_v46 }
  0x95   :  { %v669_v59 = vmul.f32 %v2525_v54, %v2452_v15  ;;  %v672_v60 = vmul.f32 %v2525_v54, %v2490_v32  ;;  %v428_v2 = vmul.f32 %v2539_v61, %v2468_v23  ;;  %v431_v3 = vmul.f32 %v2539_v61, %v2479_v28 }
  0x96   :  { %v2551_v4 = vsel %vm356_vm5, %v2525_v54, %v2533_v58  ;;  %v629_v6 = vmul.f32 0.0, %v2533_v58  ;;  %v630_v7 = vmul.f32 %v2525_v54, %v2477_v27  ;;  %v2563_v13 = vsel %vm421_vm6, %v1910_v5, %v2539_v61 }
  0x97   :  { %v1967_v62 = vpack.i.bf16 %v669_v59, %v672_v60  ;;  %v631_v8 = vmul.f32 %v2479_v28, %v2551_v4  ;;  %v1992_v10 = vpack.i.bf16 %v428_v2, %v431_v3  ;;  %v2572_v19 = vmul.f32 0.0, %v1910_v5 }
  0x98   :  { %v1982_v11 = vpack.i.bf16 %v629_v6, %v629_v6  ;;  %v430_v20 = vmul.f32 %v2477_v27, %v2563_v13  ;;  %v627_v21 = vmul.f32 %v2525_v54, %v2466_v22  ;;  %v628_v24 = vmul.f32 %v2551_v4, %v2468_v23 }
  0x99   :  { %1988 = vrot.lane.b32.xlu2 %v1987_v55, %s2392_s11  ;;  %1968 = vrot.lane.b32.xlu0 %v1967_v62, %s2390_s7  ;;  %v2017_v14 = vpack.i.bf16 %v631_v8, %v630_v7  ;;  %v427_v35 = vmul.f32 %v2563_v13, %v2466_v22  ;;  %v673_v48 = vmul.f32 %v2498_v36, %v2551_v4  ;;  %v2621_v59 = vunpack.i.l.bf16 %v1919_v0 }
  0x9a   :  { %2013 = vrot.lane.b32.xlu1 %v2012_v63, %s2393_s12  ;;  %v2037_v29 = vpack.i.bf16 %v430_v20, %v2572_v19  ;;  %v2022_v30 = vpack.i.bf16 %v628_v24, %v627_v21  ;;  %v538_v55 = vmul.f32 %v2502_v40, %v2477_v27  ;;  %v670_v60 = vmul.f32 %v2551_v4, %v2448_v12  ;;  %v1914_v33 = vpop.permute.xlu1 %1913 }
  0x9b   :  { %v2042_v43 = vpack.i.bf16 %v427_v35, %v2572_v19  ;;  %v2052_v53 = vpack.i.bf16 %v629_v6, %v673_v48  ;;  %v2092_v62 = vpack.i.bf16 %v2448_v12, %v2452_v15  ;;  %v2630_v3 = vsel %vm327_vm8, %v2621_v59, %v2559_v9  ;;  %v1929_v48 = vpop.permute.xlu0 %1928 }
  0x9c   :  { %v2027_v63 = vpack.i.bf16 %v539_v56, %v538_v55  ;;  %v2067_v2 = vpack.i.bf16 %v629_v6, %v670_v60  ;;  %v2636_v0 = vmul.f32 0.0, %v2621_v59  ;;  %v336_v5 = vmul.f32 %v2477_v27, %v2630_v3 }
  0x9d   :  { %v578_v6 = vmul.f32 %v2586_v31, %v2448_v12  ;;  %v2642_v7 = vunpack.i.l.bf16 %v1924_v18  ;;  %v2087_v8 = vpack.i.bf16 %v2498_v36, %v2490_v32  ;;  %v333_v20 = vmul.f32 %v2630_v3, %v2466_v22 }
  0x9e   :  { %v1915_v37 = vunpack.i.l.bf16 %v1914_v33  ;;  %v470_v38 = vmul.f32 %v2563_v13, %v2452_v15  ;;  %v473_v45 = vmul.f32 %v2490_v32, %v2563_v13  ;;  %v474_v46 = vmul.f32 %v2539_v61, %v2498_v36 }
  0x9f   :  { %v2653_v16 = vsel %vm158_vm9, %v2642_v7, %v2580_v25  ;;  %v2659_v17 = vmul.f32 0.0, %v2642_v7  ;;  %v1916_v47 = vunpack.i.h.bf16 %v1914_v33  ;;  %v211_v33 = vmul.f32 %v2580_v25, %v2498_v36 }
  0xa0   :  { %v167_v18 = vmul.f32 %v2477_v27, %v2653_v16  ;;  %v164_v21 = vmul.f32 %v2653_v16, %v2466_v22 }
  0xa1   :  { %1993 = vrot.lane.b32.xlu2 %v1992_v10, %s2388_s30  ;;  %1983 = vrot.lane.b32.xlu0 %v1982_v11, %s2390_s7  ;;  %v2047_v10 = vpack.i.bf16 %v336_v5, %v2636_v0  ;;  %v2107_v11 = vpack.i.bf16 %v2517_v50, %v578_v6  ;;  %v376_v5 = vmul.f32 %v2630_v3, %v2452_v15 }
  0xa2   :  { %2018 = vrot.lane.b32.xlu1 %v2017_v14, %s2390_s7  ;;  %v2648_v14 = vpop.permute.xlu2 %1933  ;;  %v2112_v24 = vpack.i.bf16 %v167_v18, %v2659_v17  ;;  %v377_v6 = vmul.f32 %v2559_v9, %v2448_v12 }
  0xa4   :  { %v2137_v18 = vpack.i.bf16 %v377_v6, %v376_v5 }
  0xa9   :  { %1998 = vrot.lane.b32.xlu0 %v1997_v26, %s2391_s10  ;;  %2023 = vrot.lane.b32.xlu2 %v2022_v30, %s2390_s7  ;;  %v2062_v26 = vpack.i.bf16 %v333_v20, %v2636_v0 }
  0xaa   :  { %2038 = vrot.lane.b32.xlu1 %v2037_v29, %s2388_s30  ;;  %v2117_v29 = vpack.i.bf16 %v164_v21, %v2659_v17  ;;  %v1939_v30 = vpop.permute.xlu2 %1938 }
  0xab   :  { %v1941_v34 = vunpack.i.h.bf16 %v1939_v30  ;;  %v1940_v35 = vunpack.i.l.bf16 %v1939_v30  ;;  %v2712_v30 = vpop.permute.xlu1 %1943 }
  0xad   :  { %v733_v55 = vsel %vm729_vm10, %v1941_v34, %v1915_v37 }
  0xae   :  { %1027 = vmatpush.msra.mxu2 %v733_v55 }
  0xb1   :  { %2003 = vrot.lane.b32.xlu0 %v2002_v39, %s2389_s6  ;;  %2033 = vrot.lane.b32.xlu2 %v2032_v44, %s2392_s11  ;;  %v471_v39 = vmul.f32 %v2539_v61, %v2448_v12  ;;  %v835_v44 = vmul.f32 %v2523_v51, %v2448_v12 }
  0xb2   :  { %2043 = vrot.lane.b32.xlu1 %v2042_v43, %s2388_s30  ;;  %v834_v43 = vmul.f32 %v2504_v41, %v2452_v15 }
  0xb3   :  { %v2127_v56 = vpack.i.bf16 %v471_v39, %v470_v38  ;;  %v2725_v38 = vpop.permute.xlu1 %1948  ;;  %v2097_v39 = vpack.i.bf16 %v2636_v0, %v2636_v0 }
  0xb4   :  { %v2072_v60 = vpack.i.bf16 %v835_v44, %v834_v43  ;;  %v2147_v43 = vpack.i.bf16 %v2659_v17, %v2659_v17  ;;  %v1946_v44 = vunpack.i.h.bf16 %v2712_v30 }
  0xb9   :  { %2008 = vrot.lane.b32.xlu0 %v2007_v49, %s2393_s12  ;;  %2058 = vrot.lane.b32.xlu2 %v2057_v52, %s2393_s12  ;;  %v1931_v49 = vunpack.i.h.bf16 %v1929_v48  ;;  %v1930_v52 = vunpack.i.l.bf16 %v1929_v48 }
  0xba   :  { %2053 = vrot.lane.b32.xlu1 %v2052_v53, %s2390_s7  ;;  %v732_v53 = vsel %vm729_vm10, %v1940_v35, %v1941_v34  ;;  %v2082_v35 = vpack.i.bf16 %v2572_v19, %v2572_v19 }
  0xbb   :  { %975 = vmatpush.msra.mxu0 %v732_v53  ;;  %v3298_v53 = vunpack.i.l.bf16 %v2648_v14 }
  0xc1   :  { %2028 = vrot.lane.b32.xlu0 %v2027_v63, %s2392_s11  ;;  %2093 = vrot.lane.b32.xlu2 %v2092_v62, %s2385_s27  ;;  %v730_v62 = vsel %vm729_vm10, %v1930_v52, %v1931_v49  ;;  %v2122_v63 = vpack.i.bf16 %v474_v46, %v473_v45 }
  0xc2   :  { %2068 = vrot.lane.b32.xlu1 %v2067_v2, %s2390_s7  ;;  %v731_v2 = vsel %vm729_vm10, %v1931_v49, %v1916_v47  ;;  %976 = vmatpush.msra.mxu0 %v730_v62  ;;  %v3299_v47 = vunpack.i.h.bf16 %v2725_v38 }
  0xc3   :  { %1028 = vmatpush.msra.mxu2 %v731_v2 }
  0xc9   :  { %2048 = vrot.lane.b32.xlu0 %v2047_v10, %s2391_s10  ;;  %2108 = vrot.lane.b32.xlu2 %v2107_v11, %s2392_s11  ;;  %v379_v10 = vmul.f32 %v2490_v32, %v2630_v3  ;;  %v380_v11 = vmul.f32 %v2559_v9, %v2498_v36 }
  0xca   :  { %2088 = vrot.lane.b32.xlu1 %v2087_v8, %s2385_s27  ;;  %v581_v8 = vmul.f32 %v2498_v36, %v2586_v31 }
  0xcb   :  { %v2132_v21 = vpack.i.bf16 %v380_v11, %v379_v10 }
  0xcc   :  { %v2077_v20 = vpack.i.bf16 %v2517_v50, %v581_v8  ;;  %v210_v50 = vmul.f32 %v2490_v32, %v2653_v16  ;;  %v2157_v32 = vpack.i.bf16 %v2531_v57, %v2531_v57 }
  0xce   :  { %v2142_v37 = vpack.i.bf16 %v211_v33, %v210_v50 }
  0xd1   :  { %2113 = vrot.lane.b32.xlu2 %v2112_v24, %s2389_s6  ;;  %2063 = vrot.lane.b32.xlu0 %v2062_v26, %s2391_s10  ;;  %v2705_v24 = vpop.permute.xlu2 %1963  ;;  %v207_v26 = vmul.f32 %v2653_v16, %v2452_v15  ;;  %v1954_v15 = vpop.permute.xlu0 %1953 }
  0xd2   :  { %2118 = vrot.lane.b32.xlu1 %v2117_v29, %s2389_s6  ;;  %v208_v29 = vmul.f32 %v2580_v25, %v2448_v12  ;;  %v1956_v45 = vunpack.i.h.bf16 %v1954_v15  ;;  %v1955_v46 = vunpack.i.l.bf16 %v1954_v15  ;;  %v1966_v55 = vunpack.i.h.bf16 %v2705_v24 }
  0xd4   :  { %v2152_v34 = vpack.i.bf16 %v208_v29, %v207_v26  ;;  %v2743_v49 = vsel %vm266_vm11, %v1946_v44, %v1955_v46  ;;  %v2748_v52 = vsel %vm266_vm11, %v3299_v47, %v1956_v45  ;;  %v2797_v47 = vld [vmem:[#allocation8 + $0x8] sm:$0xff] }
  0xd9   :  { %2128 = vrot.lane.b32.xlu2 %v2127_v56, %s2388_s30  ;;  %2073 = vrot.lane.b32.xlu0 %v2072_v60, %s2393_s12  ;;  %v2757_v56 = vsel %vm729_vm10, %v1966_v55, %v3298_v53  ;;  %v2761_v62 = vpop.permute.xlu0 %1958 }
  0xda   :  { %2123 = vrot.lane.b32.xlu1 %v2122_v63, %s2388_s30 }
  0xe1   :  { %2138 = vrot.lane.b32.xlu2 %v2137_v18, %s2391_s10  ;;  %2078 = vrot.lane.b32.xlu0 %v2077_v20, %s2392_s11 }
  0xe2   :  { %2133 = vrot.lane.b32.xlu1 %v2132_v21, %s2391_s10 }
  0xe9   :  { %2153 = vrot.lane.b32.xlu2 %v2152_v34, %s2389_s6  ;;  %2083 = vrot.lane.b32.xlu0 %v2082_v35, %s2388_s30 }
  0xea   :  { %2143 = vrot.lane.b32.xlu1 %v2142_v37, %s2389_s6 }
  0xeb   :  { %v2723_v12 = vpop.permute.xlu2 %1978 }
  0xf1   :  { %2158 = vrot.lane.b32.xlu2 %v2157_v32, %s2393_s12  ;;  %2098 = vrot.lane.b32.xlu0 %v2097_v39, %s2391_s10 }
  0xf2   :  { %2148 = vrot.lane.b32.xlu1 %v2147_v43, %s2389_s6 }
  0xf3   :  { %v2738_v48 = vpop.permute.xlu2 %1988 }
  0xf9   :  { %2103 = vrot.lane.b32.xlu0 %v2387_v1, %s2385_s27 }
  0xfb   :  { %v2759_v60 = vpop.permute.xlu2 %1993 }
 0x103   :  { %v2024_v63 = vpop.permute.xlu2 %2023  ;;  %v1974_v2 = vpop.permute.xlu1 %1973 }
 0x104   :  { %v2026_v1 = vunpack.i.h.bf16 %v2024_v63  ;;  %v2025_v21 = vunpack.i.l.bf16 %v2024_v63  ;;  %v1975_v55 = vunpack.i.l.bf16 %v1974_v2 }
 0x106   :  { %v651_v35 = vsel %vm327_vm8, %v2025_v21, %v2026_v1 }
 0x10b   :  { %v2763_v5 = vpop.permute.xlu0 %1968  ;;  %v2765_v6 = vpop.permute.xlu2 %2033 }
 0x10c   :  { %v2014_v8 = vpop.permute.xlu1 %2013 }
 0x113   :  { %v1984_v10 = vpop.permute.xlu0 %1983  ;;  %v2767_v11 = vpop.permute.xlu2 %2058 }
 0x114   :  { %v1985_v18 = vunpack.i.l.bf16 %v1984_v10  ;;  %v2019_v20 = vpop.permute.xlu1 %2018  ;;  %v1986_v26 = vunpack.i.h.bf16 %v1984_v10 }
 0x115   :  { %v2021_v29 = vunpack.i.h.bf16 %v2019_v20  ;;  %v2020_v50 = vunpack.i.l.bf16 %v2019_v20 }
 0x116   :  { %v652_v37 = vsel %vm327_vm8, %v2026_v1, %v1986_v26  ;;  %v2015_v1 = vunpack.i.l.bf16 %v2014_v8 }
 0x117   :  { %v653_v33 = vsel %vm327_vm8, %v2020_v50, %v2021_v29  ;;  %v654_v34 = vsel %vm327_vm8, %v2021_v29, %v1985_v18  ;;  %v2016_v18 = vunpack.i.h.bf16 %v2014_v8  ;;  %v1965_v29 = vunpack.i.l.bf16 %v2705_v24 }
 0x118   :  { %977 = vmatpush.msra.mxu0 %v653_v33  ;;  %1029 = vmatpush.msra.mxu2 %v654_v34  ;;  %v3300_v50 = vunpack.i.l.bf16 %v2761_v62  ;;  %v2061_v33 = vunpack.i.h.bf16 %v2767_v11  ;;  %v2060_v34 = vunpack.i.l.bf16 %v2767_v11 }
 0x11a   :  { %978 = vmatpush.msra.mxu0 %v651_v35  ;;  %1030 = vmatpush.msra.mxu2 %v652_v37  ;;  %v1976_v35 = vunpack.i.h.bf16 %v1974_v2  ;;  %v768_v2 = vsel %vm729_vm10, %v1965_v29, %v3300_v50  ;;  %v2035_v29 = vunpack.i.l.bf16 %v2765_v6 }
 0x11b   :  { %v2773_v15 = vpop.permute.xlu0 %1998  ;;  %v2775_v32 = vpop.permute.xlu2 %2093 }
 0x11c   :  { %v2777_v39 = vpop.permute.xlu1 %2038  ;;  %v816_v8 = vsel %vm158_vm9, %v1976_v35, %v2015_v1 }
 0x123   :  { %v2779_v43 = vpop.permute.xlu0 %2003  ;;  %v2781_v45 = vpop.permute.xlu2 %2108 }
 0x124   :  { %v2783_v46 = vpop.permute.xlu1 %2043 }
 0x12b   :  { %v2009_v63 = vpop.permute.xlu0 %2008  ;;  %v2785_v10 = vpop.permute.xlu2 %2113 }
 0x12c   :  { %v2011_v20 = vunpack.i.h.bf16 %v2009_v63  ;;  %v2010_v21 = vunpack.i.l.bf16 %v2009_v63  ;;  %v2787_v26 = vpop.permute.xlu1 %2053  ;;  %v817_v63 = vsel %vm158_vm9, %v2015_v1, %v2016_v18  ;;  %v1970_v18 = vunpack.i.l.bf16 %v2763_v5 }
 0x12d   :  { %v2055_v24 = vunpack.i.l.bf16 %v2787_v26 }
 0x12e   :  { %v818_v37 = vsel %vm158_vm9, %v1975_v55, %v2010_v21  ;;  %v819_v53 = vsel %vm158_vm9, %v2010_v21, %v2011_v20  ;;  %v860_v55 = vsel %vm158_vm9, %v2060_v34, %v2061_v33  ;;  %v2036_v21 = vunpack.i.h.bf16 %v2765_v6 }
 0x12f   :  { %1015 = vmatpush.msra.mxu1 %v818_v37  ;;  %1067 = vmatpush.msra.mxu3 %v819_v53  ;;  %v1990_v53 = vunpack.i.l.bf16 %v2738_v48 }
 0x131   :  { %1016 = vmatpush.msra.mxu1 %v816_v8  ;;  %1068 = vmatpush.msra.mxu3 %v817_v63  ;;  %v1971_v8 = vunpack.i.h.bf16 %v2763_v5  ;;  %v559_v5 = vsel %vm421_vm6, %v2035_v29, %v2036_v21  ;;  %v1995_v29 = vunpack.i.l.bf16 %v2759_v60 }
 0x132   :  { %1857 = vmatmul.msk.f32.vlgmr.msra.gmra.mxu3 %vm266_vm11, %v2797_v47  ;;  %1854 = vmatmul.msk.f32.vlgmr.msra.gmra.mxu1 %vm266_vm11, %v2797_v47 }
 0x133   :  { %1079 = vmatpush.msrb.mxu1 %v768_v2  ;;  %1119 = vmatpush.msrb.mxu3 %v860_v55  ;;  %v2029_v1 = vpop.permute.xlu0 %2028  ;;  %v2808_v20 = vpop.permute.xlu2 %2128  ;;  %v695_v2 = vsel %vm327_vm8, %v1970_v18, %v2055_v24  ;;  %v1991_v55 = vunpack.i.h.bf16 %v2738_v48  ;;  %v2832_v18 = vld [vmem:[#allocation8 + $0x18] sm:$0xff]  ;;  %v2041_v48 = vunpack.i.h.bf16 %v2777_v39 }
 0x134   :  { %v2031_v34 = vunpack.i.h.bf16 %v2029_v1  ;;  %v2030_v35 = vunpack.i.l.bf16 %v2029_v1  ;;  %v2816_v37 = vpop.permute.xlu1 %2068 }
 0x135   :  { %1080 = vmatpush.msrb.mxu1 %v2757_v56  ;;  %v2070_v63 = vunpack.i.l.bf16 %v2816_v37  ;;  %v560_v1 = vsel %vm421_vm6, %v2036_v21, %v1991_v55  ;;  %v948_v21 = vld [vmem:[%s3296_s4] sm:$0xff] }
 0x136   :  { %v561_v50 = vsel %vm421_vm6, %v2030_v35, %v2031_v34  ;;  %v562_v6 = vsel %vm421_vm6, %v2031_v34, %v1990_v53  ;;  %v2040_v35 = vunpack.i.l.bf16 %v2777_v39  ;;  %v2395_v53 = vmov 0  }
 0x137   :  { %1081 = vmatpush.msrb.mxu1 %v695_v2  ;;  %979 = vmatpush.msra.mxu0 %v561_v50  ;;  %v693_v56 = vsel %vm327_vm8, %v1971_v8, %v2070_v63  ;;  %v2046_v8 = vunpack.i.h.bf16 %v2783_v46  ;;  %v2045_v39 = vunpack.i.l.bf16 %v2783_v46  ;;  %v2000_v46 = vunpack.i.l.bf16 %v2773_v15 }
 0x138   :  { %1031 = vmatpush.msra.mxu2 %v562_v6  ;;  %2162 = vset.pattern.permute.xlu0 %v2395_v53  ;;  %v453_v6 = vsel %vm450_vm7, %v2040_v35, %v2041_v48 }
 0x139   :  { %1082 = vmatpush.msrb.mxu1 %v693_v56  ;;  %980 = vmatpush.msra.mxu0 %v559_v5  ;;  %v454_v56 = vsel %vm450_vm7, %v2041_v48, %v1995_v29  ;;  %v451_v5 = vsel %vm450_vm7, %v2045_v39, %v2046_v8  ;;  %v1950_v39 = vunpack.i.l.bf16 %v2725_v38 }
 0x13a   :  { %1032 = vmatpush.msra.mxu2 %v560_v1  ;;  %2263 = vset.pattern.permute.xlu1 %v2395_v53  ;;  %v1945_v53 = vunpack.i.l.bf16 %v2712_v30 }
 0x13b   :  { %v2049_v50 = vpop.permute.xlu0 %2048  ;;  %v2836_v34 = vpop.permute.xlu2 %2138  ;;  %981 = vmatpush.msra.mxu0 %v2477_v27  ;;  %1858 = vmatmul.msk.f32.gmra.mxu3 %vm266_vm11, %v2832_v18  ;;  %v1996_v27 = vunpack.i.h.bf16 %v2759_v60 }
 0x13c   :  { %1033 = vmatpush.msra.mxu2 %v2479_v28  ;;  %v2846_v2 = vpop.permute.xlu1 %2088  ;;  %953 = vperm.xlu0 %2162, %v948_v21   ;;  %v2051_v28 = vunpack.i.h.bf16 %v2049_v50  ;;  %v2050_v55 = vunpack.i.l.bf16 %v2049_v50  ;;  %v2001_v50 = vunpack.i.h.bf16 %v2773_v15  ;;  %v269_v15 = vsel %vm266_vm11, %v1945_v53, %v1946_v44 }
 0x13d   :  { %982 = vmatpush.msra.mxu0 %v2466_v22  ;;  %1855 = vmatmul.msk.f32.gmra.mxu1 %vm266_vm11, %v2832_v18  ;;  %v452_v60 = vsel %vm450_vm7, %v2046_v8, %v1996_v27  ;;  %v2860_v22 = vld [vmem:[#allocation8 + $0x28] sm:$0xff] }
 0x13e   :  { %1034 = vmatpush.msra.mxu2 %v2468_v23  ;;  %v359_v23 = vsel %vm356_vm5, %v2050_v55, %v2051_v28  ;;  %v360_v1 = vsel %vm356_vm5, %v2051_v28, %v2000_v46  ;;  %v2116_v55 = vunpack.i.h.bf16 %v2785_v10 }
 0x13f   :  { %983 = vmatpush.msra.mxu0 %v453_v6  ;;  %v2115_v6 = vunpack.i.l.bf16 %v2785_v10  ;;  %v2006_v10 = vunpack.i.h.bf16 %v2779_v43 }
 0x140   :  { %1035 = vmatpush.msra.mxu2 %v454_v56  ;;  %v2005_v56 = vunpack.i.l.bf16 %v2779_v43  ;;  %v1936_v43 = vunpack.i.h.bf16 %v2648_v14 }
 0x141   :  { %984 = vmatpush.msra.mxu0 %v451_v5  ;;  %v190_v30 = vsel %vm187_vm4, %v2115_v6, %v2116_v55  ;;  %v3302_v6 = vunpack.i.l.bf16 %v2761_v62 }
 0x142   :  { %1036 = vmatpush.msra.mxu2 %v452_v60  ;;  %v3301_v60 = vunpack.i.h.bf16 %v2725_v38  ;;  %v2892_v38 = vld [vmem:[#allocation8] sm:$0xff] }
 0x143   :  { %v2864_v48 = vpop.permute.xlu2 %2153  ;;  %v2064_v35 = vpop.permute.xlu0 %2063  ;;  %985 = vmatpush.msra.mxu0 %v359_v23  ;;  %1859 = vmatmul.msk.f32.gmra.mxu3 %vm266_vm11, %v2860_v22 }
 0x144   :  { %1037 = vmatpush.msra.mxu2 %v360_v1  ;;  %v2066_v21 = vunpack.i.h.bf16 %v2064_v35  ;;  %v2065_v29 = vunpack.i.l.bf16 %v2064_v35  ;;  %v2119_v8 = vpop.permute.xlu1 %2118  ;;  %v267_v23 = vsel %vm266_vm11, %v1950_v39, %v3301_v60  ;;  %v1961_v1 = vunpack.i.h.bf16 %v2761_v62 }
 0x145   :  { %1856 = vmatmul.msk.f32.gmra.mxu1 %vm266_vm11, %v2860_v22  ;;  %v2121_v46 = vunpack.i.h.bf16 %v2119_v8  ;;  %v2120_v5 = vunpack.i.l.bf16 %v2119_v8  ;;  %v2110_v60 = vunpack.i.l.bf16 %v2781_v45 }
 0x146   :  { %v357_v27 = vsel %vm356_vm5, %v2065_v29, %v2066_v21  ;;  %v358_v28 = vsel %vm356_vm5, %v2066_v21, %v2001_v50  ;;  %v191_v21 = vsel %vm187_vm4, %v2116_v55, %v2005_v56  ;;  %v2056_v55 = vunpack.i.h.bf16 %v2787_v26 }
 0x147   :  { %986 = vmatpush.msra.mxu0 %v357_v27  ;;  %1038 = vmatpush.msra.mxu2 %v358_v28  ;;  %v188_v8 = vsel %vm187_vm4, %v2120_v5, %v2121_v46  ;;  %v189_v39 = vsel %vm187_vm4, %v2121_v46, %v2006_v10  ;;  %v2071_v56 = vunpack.i.h.bf16 %v2816_v37  ;;  %v3303_v46 = vunpack.i.l.bf16 %v2648_v14 }
 0x148   :  { %v696_v14 = vsel %vm327_vm8, %v2055_v24, %v2056_v55  ;;  %v1981_v10 = vunpack.i.h.bf16 %v2723_v12  ;;  %v515_v24 = vld [vmem:[#allocation2 + $0x38] sm:$0xff] }
 0x149   :  { %987 = vmatpush.msra.mxu0 %v269_v15  ;;  %1039 = vmatpush.msra.mxu2 %v2743_v49  ;;  %v769_v15 = vsel %vm729_vm10, %v3302_v6, %v1961_v1  ;;  %v767_v11 = vsel %vm729_vm10, %v3303_v46, %v1936_v43  ;;  %v2141_v46 = vunpack.i.h.bf16 %v2836_v34 }
 0x14a   :  { %v601_v26 = vsel %vm421_vm6, %v1981_v10, %v2110_v60 }
 0x14b   :  { %v2159_v35 = vpop.permute.xlu2 %2158  ;;  %v2074_v50 = vpop.permute.xlu0 %2073  ;;  %988 = vmatpush.msra.mxu0 %v267_v23  ;;  %1040 = vmatpush.msra.mxu2 %v2748_v52 }
 0x14c   :  { %v2160_v44 = vunpack.i.l.bf16 %v2159_v35  ;;  %v2076_v49 = vunpack.i.h.bf16 %v2074_v50  ;;  %v2075_v53 = vunpack.i.l.bf16 %v2074_v50  ;;  %v2890_v29 = vpop.permute.xlu1 %2123  ;;  %v2161_v27 = vunpack.i.h.bf16 %v2159_v35  ;;  %v2920_v35 = vld [vmem:[#allocation8 + $0x10] sm:$0xff] }
 0x14d   :  { %989 = vmatpush.msra.mxu0 %v190_v30  ;;  %1041 = vmatpush.msra.mxu2 %v191_v21  ;;  %v2111_v50 = vunpack.i.h.bf16 %v2781_v45  ;;  %v694_v30 = vsel %vm327_vm8, %v2070_v63, %v2071_v56  ;;  %v513_v45 = vld [vmem:[#allocation2 + $0x50] sm:$0xff]  ;;  %v2126_v63 = vunpack.i.h.bf16 %v2890_v29  ;;  %v2125_v21 = vunpack.i.l.bf16 %v2890_v29 }
 0x14e   :  { %v858_v52 = vsel %vm158_vm9, %v2075_v53, %v2076_v49  ;;  %v861_v28 = vsel %vm158_vm9, %v2061_v33, %v2160_v44  ;;  %v1980_v33 = vunpack.i.l.bf16 %v2723_v12  ;;  %v859_v62 = vsel %vm158_vm9, %v2076_v49, %v2161_v27 }
 0x14f   :  { %990 = vmatpush.msra.mxu0 %v188_v8  ;;  %1042 = vmatpush.msra.mxu2 %v189_v39  ;;  %v602_v12 = vsel %vm421_vm6, %v2110_v60, %v2111_v50  ;;  %v514_v39 = vld [vmem:[#allocation2 + $0x68] sm:$0xff]  ;;  %v2131_v27 = vunpack.i.h.bf16 %v2808_v20  ;;  %v496_v29 = vsel %vm450_vm7, %v2125_v21, %v2126_v63 }
 0x150   :  { %1120 = vmatpush.msrb.mxu3 %v858_v52  ;;  %991 = vmatmul.f32.vlgmr.msra.gmra.mxu0 %v2892_v38  ;;  %v2937_v52 = vld [vmem:[#allocation8 + $0x20] sm:$0xff] }
 0x151   :  { %1043 = vmatmul.f32.vlgmr.msra.gmra.mxu2 %v2892_v38  ;;  %1171 = vmatpush.msrb.mxu0 %v861_v28  ;;  %v2130_v28 = vunpack.i.l.bf16 %v2808_v20 }
 0x152   :  { %1131 = vmatpush.msra.mxu3 %v769_v15 }
 0x153   :  { %1860 = vmatmul.msk.f32.vlgmr.msrb.gmra.mxu3 %vm266_vm11, %v2797_v47  ;;  %v2079_v5 = vpop.permute.xlu0 %2078  ;;  %1172 = vmatpush.msrb.mxu0 %v859_v62  ;;  %v494_v20 = vsel %vm450_vm7, %v2130_v28, %v2131_v27 }
 0x154   :  { %1132 = vmatpush.msra.mxu3 %v767_v11  ;;  %v2081_v23 = vunpack.i.h.bf16 %v2079_v5  ;;  %v2080_v1 = vunpack.i.l.bf16 %v2079_v5  ;;  %v2134_v53 = vpop.permute.xlu1 %2133  ;;  %v2140_v11 = vunpack.i.l.bf16 %v2836_v34  ;;  %v2090_v5 = vunpack.i.l.bf16 %v2846_v2 }
 0x155   :  { %v2136_v6 = vunpack.i.h.bf16 %v2134_v53  ;;  %v2135_v15 = vunpack.i.l.bf16 %v2134_v53  ;;  %v2096_v34 = vunpack.i.h.bf16 %v2775_v32  ;;  %v2156_v53 = vunpack.i.h.bf16 %v2864_v48 }
 0x156   :  { %1133 = vmatpush.msra.mxu3 %v696_v14  ;;  %v603_v44 = vsel %vm421_vm6, %v1980_v33, %v2080_v1  ;;  %v604_v49 = vsel %vm421_vm6, %v2080_v1, %v2081_v23  ;;  %v2091_v33 = vunpack.i.h.bf16 %v2846_v2  ;;  %v2095_v14 = vunpack.i.l.bf16 %v2775_v32 }
 0x157   :  { %1083 = vmatpush.msrb.mxu1 %v603_v44  ;;  %v402_v1 = vsel %vm356_vm5, %v2135_v15, %v2136_v6  ;;  %v400_v10 = vsel %vm356_vm5, %v2140_v11, %v2141_v46  ;;  %v2155_v32 = vunpack.i.l.bf16 %v2864_v48 }
 0x158   :  { %1134 = vmatpush.msra.mxu3 %v694_v30  ;;  %994 = vmatmul.f32.gmra.mxu0 %v2920_v35 }
 0x159   :  { %1084 = vmatpush.msrb.mxu1 %v601_v26  ;;  %1046 = vmatmul.f32.gmra.mxu2 %v2920_v35  ;;  %v304_v26 = vsel %vm266_vm11, %v2095_v14, %v2096_v34 }
 0x15a   :  { %1135 = vmatpush.msra.mxu3 %v604_v49  ;;  %v306_v49 = vsel %vm266_vm11, %v2090_v5, %v2091_v33 }
 0x15b   :  { %1861 = vmatmul.msk.f32.gmra.mxu3 %vm266_vm11, %v2832_v18  ;;  %v2084_v37 = vpop.permute.xlu0 %2083  ;;  %1085 = vmatpush.msrb.mxu1 %v515_v24 }
 0x15c   :  { %1136 = vmatpush.msra.mxu3 %v602_v12  ;;  %v2086_v43 = vunpack.i.h.bf16 %v2084_v37  ;;  %v2085_v8 = vunpack.i.l.bf16 %v2084_v37 }
 0x15d   :  { %1086 = vmatpush.msrb.mxu1 %v513_v45 }
 0x15e   :  { %1137 = vmatpush.msra.mxu3 %v2498_v36  ;;  %v495_v55 = vsel %vm450_vm7, %v2085_v8, %v2125_v21  ;;  %v493_v56 = vsel %vm450_vm7, %v2086_v43, %v2130_v28  ;;  %v2144_v36 = vpop.permute.xlu1 %2143  ;;  %v231_v43 = vsel %vm187_vm4, %v2155_v32, %v2156_v53 }
 0x15f   :  { %1087 = vmatpush.msrb.mxu1 %v495_v55  ;;  %v2146_v30 = vunpack.i.h.bf16 %v2144_v36  ;;  %v2145_v44 = vunpack.i.l.bf16 %v2144_v36 }
 0x160   :  { %1138 = vmatpush.msra.mxu3 %v514_v39  ;;  %997 = vmatmul.f32.gmra.mxu0 %v2937_v52 }
 0x161   :  { %1088 = vmatpush.msrb.mxu1 %v493_v56  ;;  %1049 = vmatmul.f32.gmra.mxu2 %v2937_v52  ;;  %v233_v63 = vsel %vm187_vm4, %v2145_v44, %v2146_v30 }
 0x162   :  { %1139 = vmatpush.msra.mxu3 %v496_v29 }
 0x163   :  { %1862 = vmatmul.msk.f32.gmra.mxu3 %vm266_vm11, %v2860_v22  ;;  %v2099_v62 = vpop.permute.xlu0 %2098 }
 0x164   :  { %1140 = vmatpush.msra.mxu3 %v494_v20  ;;  %v2101_v60 = vunpack.i.h.bf16 %v2099_v62  ;;  %v2100_v23 = vunpack.i.l.bf16 %v2099_v62 }
 0x166   :  { %1141 = vmatpush.msra.mxu3 %v402_v1  ;;  %v401_v50 = vsel %vm356_vm5, %v2100_v23, %v2135_v15  ;;  %v399_v2 = vsel %vm356_vm5, %v2101_v60, %v2140_v11  ;;  %v2149_v24 = vpop.permute.xlu1 %2148 }
 0x167   :  { %1089 = vmatpush.msrb.mxu1 %v401_v50  ;;  %v2150_v21 = vunpack.i.l.bf16 %v2149_v24  ;;  %v2151_v8 = vunpack.i.h.bf16 %v2149_v24 }
 0x168   :  { %1142 = vmatpush.msra.mxu3 %v400_v10  ;;  %1863 = vmatmul.msk.f32.vlgmr.msrb.gmra.mxu0 %vm266_vm11, %v2797_v47 }
 0x169   :  { %1090 = vmatpush.msrb.mxu1 %v399_v2  ;;  %v232_v39 = vsel %vm187_vm4, %v2150_v21, %v2145_v44  ;;  %v230_v27 = vsel %vm187_vm4, %v2151_v8, %v2155_v32 }
 0x16a   :  { %1143 = vmatpush.msra.mxu3 %v306_v49 }
 0x16b   :  { %v2104_v12 = vpop.permute.xlu0 %2103 }
 0x16c   :  { %1144 = vmatpush.msra.mxu3 %v304_v26  ;;  %v2106_v45 = vunpack.i.h.bf16 %v2104_v12  ;;  %v2105_v37 = vunpack.i.l.bf16 %v2104_v12  ;;  %v3001_v12 = vld [vmem:[#allocation5] sm:$0xff] }
 0x16e   :  { %1145 = vmatpush.msra.mxu3 %v233_v63  ;;  %v305_v47 = vsel %vm266_vm11, %v2105_v37, %v2090_v5  ;;  %v303_v48 = vsel %vm266_vm11, %v2106_v45, %v2095_v14 }
 0x16f   :  { %1091 = vmatpush.msrb.mxu1 %v305_v47 }
 0x170   :  { %1146 = vmatpush.msra.mxu3 %v231_v43  ;;  %1864 = vmatmul.msk.f32.gmra.mxu0 %vm266_vm11, %v2832_v18 }
 0x171   :  { %1147 = vmatmul.f32.vlgmr.msra.gmra.mxu3 %v2892_v38  ;;  %1092 = vmatpush.msrb.mxu1 %v303_v48 }
 0x173   :  { %1093 = vmatpush.msrb.mxu1 %v232_v39  ;;  %v3006_v39 = vld [vmem:[#allocation2 + $0x30] sm:$0xff] }
 0x175   :  { %1094 = vmatpush.msrb.mxu1 %v230_v27 }
 0x176   :  { %1095 = vmatmul.f32.vlgmr.msrb.gmra.mxu1 %v2892_v38 }
 0x178   :  { %1865 = vmatmul.msk.f32.gmra.mxu0 %vm266_vm11, %v2860_v22 }
 0x179   :  { %1150 = vmatmul.f32.gmra.mxu3 %v2920_v35 }
 0x17e   :  { %1098 = vmatmul.f32.gmra.mxu1 %v2920_v35 }
 0x181   :  { %1153 = vmatmul.f32.gmra.mxu3 %v2937_v52 }
 0x186   :  { %1101 = vmatmul.f32.gmra.mxu1 %v2937_v52 }
 0x1ae   :  { %v2983_v55 = vpop.permute.xlu0 %953 }
 0x1af   :  { %v1018_v38 = vpop.f32.mrf.mxu1 }
 0x1b5   :  { %v1070_v18 = vpop.f32.mrf.mxu3 }
 0x1ba   :  { %v2993_v60 = vpop.f32.mrf.mxu1 }
 0x1be   :  { %v2981_v28 = vpop.f32.mrf.mxu3 }
 0x1c2   :  { %v2999_v32 = vpop.f32.mrf.mxu1 }
 0x1c6   :  { %v2985_v6 = vpop.f32.mrf.mxu3 }
 0x1cd   :  { %v992_v15 = vpop.f32.mrf.mxu0 }
 0x1ce   :  { %v993_v29 = vadd.f32 %v992_v15, %v2983_v55 }
 0x1d0   :  { %v1019_v56 = vadd.f32 %v1018_v38, %v993_v29  ;;  %v3012_v29 = vld [vmem:[#allocation5 + $0x8] sm:$0xff] }
 0x1d2   :  { %v1866_v36 = vmul.f32 -1.442695, %v1019_v56 }
 0x1d4   :  { %2264 = vpow2.f32 %v1866_v36  ;;  %v1044_v22 = vpop.f32.mrf.mxu2 }
 0x1d5   :  { %v1045_v35 = vadd.f32 %v1044_v22, %v2983_v55  ;;  %v2989_v62 = vpop.f32.mrf.mxu0 }
 0x1d6   :  { %v1122_v46 = vpop.f32.mrf.mxu3 }
 0x1d7   :  { %v1071_v11 = vadd.f32 %v1070_v18, %v1045_v35 }
 0x1d9   :  { %v1867_v52 = vmul.f32 -1.442695, %v1071_v11 }
 0x1da   :  { %v2265_v20 = vpop.eup %2264 }
 0x1db   :  { %v1195_v33 = vadd.f32 1.0, %v2265_v20  ;;  %2266 = vpow2.f32 %v1867_v52 }
 0x1dd   :  { %2268 = vrcp.f32 %v1195_v33  ;;  %v1210_v10 = vand.u32 2147483648, %v1195_v33  ;;  %vm1204_vm12 = vweird.f32 %v1195_v33  ;;  %v1208_v30 = vand.u32 2147483647, %v1195_v33  ;;  %v2995_v49 = vpop.f32.mrf.mxu0 }
 0x1de   :  { %v2991_v5 = vpop.f32.mrf.mxu3 }
 0x1df   :  { %v1211_v2 = vor.u32 1.1754944e-38, %v1210_v10  ;;  %vm1209_vm15 = vcmp.eq.f32.partialorder %v1208_v30, 8.507059e+37 }
 0x1e1   :  { %v2267_v23 = vpop.eup %2266 }
 0x1e2   :  { %v1196_v1 = vadd.f32 1.0, %v2267_v23 }
 0x1e3   :  { %v2269_v34 = vpop.eup %2268 }
 0x1e4   :  { %v1200_v14 = vmul.f32 %v2269_v34, %v1195_v33  ;;  %2270 = vrcp.f32 %v1196_v1  ;;  %vm1205_vm13 = vweird.f32 %v2269_v34  ;;  %v1225_v47 = vand.u32 2147483648, %v1196_v1 }
 0x1e5   :  { %vm1206_vm14 = vmor %vm1204_vm12, %vm1205_vm13  ;;  %vm1219_vm0 = vweird.f32 %v1196_v1  ;;  %v1223_v48 = vand.u32 2147483647, %v1196_v1  ;;  %v1174_v56 = vpop.f32.mrf.mxu0 }
 0x1e6   :  { %v1201_v50 = vsub.f32 1.0, %v1200_v14  ;;  %v2997_v53 = vpop.f32.mrf.mxu3  ;;  %v1226_v38 = vor.u32 1.1754944e-38, %v1225_v47 }
 0x1e7   :  { %vm1224_vm3 = vcmp.eq.f32.partialorder %v1223_v48, 8.507059e+37 }
 0x1e8   :  { %v1202_v44 = vmul.f32 %v2269_v34, %v1201_v50 }
 0x1ea   :  { %v2271_v26 = vpop.eup %2270  ;;  %v1203_v24 = vadd.f32 %v2269_v34, %v1202_v44 }
 0x1eb   :  { %v1215_v45 = vmul.f32 %v2271_v26, %v1196_v1  ;;  %vm1220_vm1 = vweird.f32 %v2271_v26 }
 0x1ec   :  { %v1207_v37 = vsel %vm1206_vm14, %v2269_v34, %v1203_v24  ;;  %vm1221_vm2 = vmor %vm1219_vm0, %vm1220_vm1 }
 0x1ed   :  { %v1212_v63 = vsel %vm1209_vm15, %v1211_v2, %v1207_v37  ;;  %v1216_v21 = vsub.f32 1.0, %v1215_v45 }
 0x1ee   :  { %v3004_v43 = vmul.f32 %v3001_v12, %v1212_v63 }
 0x1ef   :  { %v1217_v8 = vmul.f32 %v2271_v26, %v1216_v21 }
 0x1f0   :  { %v2163_v27 = vpack.i.bf16 %v3004_v43, %v3006_v39  ;;  %v1351_v18 = vmul.f32 %v3004_v43, %v2653_v16  ;;  %v1471_v23 = vmul.f32 %v3004_v43, %v2563_v13  ;;  %v1429_v30 = vmul.f32 %v3004_v43, %v2630_v3 }
 0x1f1   :  { %v1218_v15 = vadd.f32 %v2271_v26, %v1217_v8 }
 0x1f2   :  { %2164 = vrot.lane.b32.xlu0 %v2163_v27, %s2385_s27  ;;  %v2178_v36 = vpack.i.bf16 %v1351_v18, %v2659_v17  ;;  %v2168_v50 = vpack.i.bf16 %v1471_v23, %v2572_v19 }
 0x1f3   :  { %v1222_v22 = vsel %vm1221_vm2, %v2271_v26, %v1218_v15  ;;  %v1096_v11 = vpop.f32.mrf.mxu1 }
 0x1f4   :  { %v1148_v35 = vpop.f32.mrf.mxu3  ;;  %v1227_v52 = vsel %vm1224_vm3, %v1226_v38, %v1222_v22  ;;  %v1097_v33 = vadd.f32 %v1096_v11, %v2983_v55  ;;  %2179 = vrot.lane.b32.xlu2 %v2178_v36, %s2389_s6  ;;  %v3033_v22 = vld [vmem:[#allocation5 + $0x10] sm:$0xff] }
 0x1f5   :  { %v1149_v20 = vadd.f32 %v1148_v35, %v2983_v55  ;;  %v3022_v1 = vmul.f32 %v3012_v29, %v1227_v52 }
 0x1f6   :  { %v1123_v34 = vadd.f32 %v1122_v46, %v1097_v33  ;;  %v2173_v46 = vpack.i.bf16 %v1429_v30, %v2636_v0 }
 0x1f7   :  { %v1175_v14 = vadd.f32 %v1174_v56, %v1149_v20  ;;  %v2188_v55 = vpack.i.bf16 %v3022_v1, %v3004_v43  ;;  %v3035_v20 = vld [vmem:[#allocation5 + $0x18] sm:$0xff] }
 0x1f8   :  { %v1868_v17 = vmul.f32 -1.442695, %v1123_v34 }
 0x1f9   :  { %v1869_v10 = vmul.f32 -1.442695, %v1175_v14 }
 0x1fa   :  { %2272 = vpow2.f32 %v1868_v17  ;;  %2169 = vrot.lane.b32.xlu0 %v2168_v50, %s2388_s30 }
 0x1fb   :  { %2274 = vpow2.f32 %v1869_v10 }
 0x1fc   :  { %2189 = vrot.lane.b32.xlu2 %v2188_v55, %s2394_s0 }
 0x200   :  { %v2273_v44 = vpop.eup %2272 }
 0x201   :  { %v2275_v2 = vpop.eup %2274  ;;  %v1197_v26 = vadd.f32 1.0, %v2273_v44 }
 0x202   :  { %v1198_v24 = vadd.f32 1.0, %v2275_v2  ;;  %2174 = vrot.lane.b32.xlu0 %v2173_v46, %s2391_s10  ;;  %v1521_v46 = vmul.f32 %v3022_v1, %v2586_v31  ;;  %v1520_v2 = vmul.f32 %v2502_v40, %v3004_v43 }
 0x203   :  { %2276 = vrcp.f32 %v1197_v26  ;;  %v1240_v8 = vand.u32 2147483648, %v1197_v26  ;;  %v1238_v18 = vand.u32 2147483647, %v1197_v26  ;;  %vm1234_vm14 = vweird.f32 %v1197_v26 }
 0x204   :  { %2278 = vrcp.f32 %v1198_v24  ;;  %v1255_v15 = vand.u32 2147483648, %v1198_v24  ;;  %v1253_v0 = vand.u32 2147483647, %v1198_v24  ;;  %vm1249_vm0 = vweird.f32 %v1198_v24 }
 0x205   :  { %v1241_v36 = vor.u32 1.1754944e-38, %v1240_v8  ;;  %vm1239_vm1 = vcmp.eq.f32.partialorder %v1238_v18, 8.507059e+37  ;;  %v1640_v18 = vmul.f32 %v2504_v41, %v3004_v43 }
 0x206   :  { %v1256_v52 = vor.u32 1.1754944e-38, %v1255_v15  ;;  %vm1254_vm3 = vcmp.eq.f32.partialorder %v1253_v0, 8.507059e+37  ;;  %v1371_v0 = vmul.f32 %v3006_v39, %v2642_v7 }
 0x209   :  { %v2277_v45 = vpop.eup %2276 }
 0x20a   :  { %v2279_v37 = vpop.eup %2278  ;;  %v1230_v63 = vmul.f32 %v2277_v45, %v1197_v26  ;;  %vm1235_vm12 = vweird.f32 %v2277_v45 }
 0x20b   :  { %v1245_v21 = vmul.f32 %v2279_v37, %v1198_v24  ;;  %vm1250_vm13 = vweird.f32 %v2279_v37  ;;  %vm1236_vm15 = vmor %vm1234_vm14, %vm1235_vm12  ;;  %v2223_v24 = vpack.i.bf16 %v1521_v46, %v1520_v2  ;;  %vm1716_vm12 = vcmask 588800  }
 0x20c   :  { %v1231_v47 = vsub.f32 1.0, %v1230_v63  ;;  %vm1251_vm2 = vmor %vm1249_vm0, %vm1250_vm13  ;;  %v1472_v63 = vmul.f32 %v2539_v61, %v3022_v1 }
 0x20d   :  { %v1246_v48 = vsub.f32 1.0, %v1245_v21 }
 0x20e   :  { %v1232_v27 = vmul.f32 %v2277_v45, %v1231_v47  ;;  %v2228_v8 = vpack.i.bf16 %v2572_v19, %v1472_v63  ;;  %v1641_v19 = vmul.f32 %v3022_v1, %v2523_v51 }
 0x20f   :  { %v1247_v38 = vmul.f32 %v2279_v37, %v1246_v48 }
 0x210   :  { %v1233_v56 = vadd.f32 %v2277_v45, %v1232_v27  ;;  %v2213_v15 = vpack.i.bf16 %v1641_v19, %v1640_v18 }
 0x211   :  { %v1248_v35 = vadd.f32 %v2279_v37, %v1247_v38  ;;  %v1352_v38 = vmul.f32 %v2580_v25, %v3022_v1 }
 0x212   :  { %v1237_v11 = vsel %vm1236_vm15, %v2277_v45, %v1233_v56  ;;  %v2208_v45 = vpack.i.bf16 %v3006_v39, %v3022_v1 }
 0x213   :  { %v1242_v33 = vsel %vm1239_vm1, %v1241_v36, %v1237_v11  ;;  %v1252_v23 = vsel %vm1251_vm2, %v2279_v37, %v1248_v35  ;;  %v2253_v36 = vpack.i.bf16 %v1371_v0, %v1352_v38  ;;  %v949_v35 = vld [vmem:[%s3296_s4 + $0x8] sm:$0xff] }
 0x214   :  { %v3038_v34 = vmul.f32 %v3033_v22, %v1242_v33  ;;  %v1257_v14 = vsel %vm1254_vm3, %v1256_v52, %v1252_v23 }
 0x215   :  { %v3041_v17 = vmul.f32 %v3035_v20, %v1257_v14 }
 0x216   :  { %1345 = vst [vmem:[#allocation2 + $0x50] sm:$0xff] %v3038_v34  ;;  %v2183_v10 = vpack.i.bf16 %v3038_v34, %v3006_v39  ;;  %v1492_v50 = vmul.f32 %v3038_v34, %v2563_v13  ;;  %v1661_v55 = vmul.f32 %v2504_v41, %v3038_v34  ;;  %v1583_v44 = vmul.f32 %v2525_v54, %v3038_v34 }
 0x217   :  { %1346 = vst [vmem:[#allocation2 + $0x68] sm:$0xff] %v3041_v17  ;;  %v1564_v13 = vmul.f32 %v3006_v39, %v2533_v58  ;;  %v1541_v37 = vmul.f32 %v2502_v40, %v3038_v34  ;;  %v1522_v58 = vmul.f32 %v3006_v39, %v2506_v42  ;;  %v2238_v47 = vpack.i.bf16 %v3006_v39, %v3041_v17 }
 0x218   :  { %2184 = vrot.lane.b32.xlu1 %v2183_v10, %s2394_s0  ;;  %1499 = vrot.lane.b32.xlu2 %v1492_v50, %s2388_s30  ;;  %v2193_v30 = vpack.i.bf16 %v1661_v55, %v2531_v57  ;;  %v1662_v40 = vmul.f32 %v3041_v17, %v2523_v51  ;;  %v1450_v42 = vmul.f32 %v3038_v34, %v2630_v3 }
 0x219   :  { %v2198_v26 = vpack.i.bf16 %v1583_v44, %v1564_v13  ;;  %v2203_v21 = vpack.i.bf16 %v1541_v37, %v1522_v58  ;;  %v1584_v27 = vmul.f32 %v3041_v17, %v2551_v4  ;;  %v1563_v51 = vmul.f32 %v3022_v1, %v2551_v4 }
 0x21a   :  { %2194 = vrot.lane.b32.xlu0 %v2193_v30, %s2393_s12  ;;  %v2243_v48 = vpack.i.bf16 %v2531_v57, %v1662_v40  ;;  %v1451_v57 = vmul.f32 %v2559_v9, %v3041_v17  ;;  %v1562_v41 = vmul.f32 %v2525_v54, %v3004_v43  ;;  %v1430_v4 = vmul.f32 %v2559_v9, %v3022_v1 }
 0x21b   :  { %v2248_v3 = vpack.i.bf16 %v1564_v13, %v1584_v27  ;;  %v1449_v54 = vmul.f32 %v3006_v39, %v2621_v59  ;;  %v1493_v7 = vmul.f32 %v2539_v61, %v3041_v17  ;;  %v1542_v52 = vmul.f32 %v3041_v17, %v2586_v31  ;;  %v950_v61 = vld [vmem:[%s3296_s4 + $0x10] sm:$0xff] }
 0x21c   :  { %v2218_v56 = vpack.i.bf16 %v1563_v51, %v1562_v41  ;;  %v1373_v23 = vmul.f32 %v2580_v25, %v3041_v17  ;;  %v1372_v9 = vmul.f32 %v3038_v34, %v2653_v16 }
 0x21d   :  { %v2233_v11 = vpack.i.bf16 %v1449_v54, %v1430_v4  ;;  %v2258_v33 = vpack.i.bf16 %v1522_v58, %v1542_v52 }
 0x220   :  { %2199 = vrot.lane.b32.xlu1 %v2198_v26, %s2390_s7  ;;  %2224 = vrot.lane.b32.xlu2 %v2223_v24, %s2392_s11 }
 0x222   :  { %2209 = vrot.lane.b32.xlu0 %v2208_v45, %s2385_s27 }
 0x228   :  { %2204 = vrot.lane.b32.xlu1 %v2203_v21, %s2392_s11  ;;  %2239 = vrot.lane.b32.xlu2 %v2238_v47, %s2394_s0 }
 0x22a   :  { %2229 = vrot.lane.b32.xlu0 %v2228_v8, %s2388_s30 }
 0x230   :  { %1457 = vrot.lane.b32.xlu1 %v1450_v42, %s2391_s10  ;;  %2244 = vrot.lane.b32.xlu2 %v2243_v48, %s2393_s12 }
 0x232   :  { %1415 = vrot.lane.b32.xlu0 %v3038_v34, %s2385_s27 }
 0x238   :  { %2214 = vrot.lane.b32.xlu1 %v2213_v15, %s2393_s12  ;;  %2249 = vrot.lane.b32.xlu2 %v2248_v3, %s2390_s7 }
 0x23a   :  { %1459 = vrot.lane.b32.xlu0 %v1451_v57, %s2391_s10 }
 0x240   :  { %2219 = vrot.lane.b32.xlu1 %v2218_v56, %s2390_s7  ;;  %2254 = vrot.lane.b32.xlu2 %v2253_v36, %s2389_s6 }
 0x242   :  { %958 = vperm.xlu0 %2162, %v949_v35  }
 0x248   :  { %2234 = vrot.lane.b32.xlu1 %v2233_v11, %s2391_s10  ;;  %1501 = vrot.lane.b32.xlu2 %v1493_v7, %s2388_s30 }
 0x24e   :  { %v3135_v31 = vpop.permute.xlu2 %2179 }
 0x250   :  { %2259 = vrot.lane.b32.xlu1 %v2258_v33, %s2392_s11  ;;  %1381 = vrot.lane.b32.xlu2 %v1373_v23, %s2389_s6 }
 0x256   :  { %v2190_v25 = vpop.permute.xlu2 %2189 }
 0x257   :  { %v2192_v26 = vunpack.i.h.bf16 %v2190_v25  ;;  %v2191_v24 = vunpack.i.l.bf16 %v2190_v25 }
 0x258   :  { %1379 = vrot.lane.b32.xlu1 %v1372_v9, %s2389_s6 }
 0x259   :  { %v1613_v42 = vsel %vm729_vm10, %v2191_v24, %v2192_v26  ;;  %v2182_v24 = vunpack.i.h.bf16 %v3135_v31 }
 0x260   :  { %1417 = vrot.lane.b32.xlu1 %v3041_v17, %s2385_s27 }
 0x264   :  { %v3137_v59 = vpop.permute.xlu0 %2164 }
 0x265   :  { %v2167_v9 = vunpack.i.h.bf16 %v3137_v59 }
 0x268   :  { %963 = vperm.xlu1 %2263, %v950_v61   ;;  %v2166_v61 = vunpack.i.l.bf16 %v3137_v59 }
 0x26c   :  { %v2170_v16 = vpop.permute.xlu0 %2169 }
 0x26d   :  { %v2172_v36 = vunpack.i.h.bf16 %v2170_v16  ;;  %v2171_v35 = vunpack.i.l.bf16 %v2170_v16 }
 0x26f   :  { %v1482_v16 = vsel %vm450_vm7, %v2171_v35, %v2172_v36 }
 0x272   :  { %v3139_v39 = vpop.permute.xlu2 %1499 }
 0x274   :  { %v2175_v55 = vpop.permute.xlu0 %2174 }
 0x275   :  { %v2177_v7 = vunpack.i.h.bf16 %v2175_v55  ;;  %v2176_v52 = vunpack.i.l.bf16 %v2175_v55 }
 0x277   :  { %v1440_v59 = vsel %vm356_vm5, %v2176_v52, %v2177_v7 }
 0x27a   :  { %v2225_v50 = vpop.permute.xlu2 %2224 }
 0x27b   :  { %v2227_v3 = vunpack.i.h.bf16 %v2225_v50  ;;  %v2226_v57 = vunpack.i.l.bf16 %v2225_v50 }
 0x27d   :  { %v1532_v4 = vsel %vm421_vm6, %v2226_v57, %v2227_v3 }
 0x282   :  { %v3147_v44 = vpop.permute.xlu2 %2239 }
 0x28a   :  { %v3141_v14 = vpop.permute.xlu1 %2184  ;;  %v3153_v2 = vpop.permute.xlu2 %2244 }
 0x28b   :  { %v2186_v37 = vunpack.i.l.bf16 %v3141_v14 }
 0x28c   :  { %v3149_v46 = vpop.permute.xlu0 %2194 }
 0x28d   :  { %v2196_v58 = vunpack.i.l.bf16 %v3149_v46  ;;  %v1614_v48 = vsel %vm729_vm10, %v2192_v26, %v2186_v37  ;;  %v1401_v37 = vsel %vm266_vm11, %v2166_v61, %v2167_v9 }
 0x292   :  { %v3143_v10 = vpop.permute.xlu1 %2199  ;;  %v3163_v19 = vpop.permute.xlu2 %2249 }
 0x293   :  { %v2201_v51 = vunpack.i.l.bf16 %v3143_v10 }
 0x294   :  { %v3157_v47 = vpop.permute.xlu0 %2209 }
 0x295   :  { %v2211_v50 = vunpack.i.l.bf16 %v3157_v47 }
 0x29a   :  { %v3145_v30 = vpop.permute.xlu1 %2204  ;;  %v3180_v25 = vpop.permute.xlu2 %2254 }
 0x29b   :  { %v2206_v38 = vunpack.i.l.bf16 %v3145_v30 }
 0x29c   :  { %v3167_v41 = vpop.permute.xlu0 %2229 }
 0x29d   :  { %v2231_v54 = vunpack.i.l.bf16 %v3167_v41  ;;  %v1533_v11 = vsel %vm421_vm6, %v2227_v3, %v2206_v38  ;;  %v2252_v3 = vunpack.i.h.bf16 %v3163_v19 }
 0x29f   :  { %v1483_v55 = vsel %vm450_vm7, %v2172_v36, %v2231_v54  ;;  %v2232_v36 = vunpack.i.h.bf16 %v3167_v41 }
 0x2a1   :  { %v1503_v52 = vsel %vm450_vm7, %v2232_v36, %v3139_v39 }
 0x2a2   :  { %v3151_v13 = vpop.permute.xlu1 %1457  ;;  %v1502_v35 = vpop.permute.xlu2 %1501 }
 0x2a3   :  { %v1504_v41 = vsel %vm450_vm7, %v3139_v39, %v1502_v35 }
 0x2aa   :  { %v2215_v45 = vpop.permute.xlu1 %2214  ;;  %v1382_v39 = vpop.permute.xlu2 %1381 }
 0x2ab   :  { %v2217_v63 = vunpack.i.h.bf16 %v2215_v45  ;;  %v2216_v21 = vunpack.i.l.bf16 %v2215_v45  ;;  %v2256_v45 = vunpack.i.l.bf16 %v3180_v25 }
 0x2ad   :  { %v1652_v8 = vsel %vm158_vm9, %v2216_v21, %v2217_v63  ;;  %v1653_v40 = vsel %vm158_vm9, %v2217_v63, %v2196_v58  ;;  %v2247_v58 = vunpack.i.h.bf16 %v3153_v2  ;;  %v2246_v63 = vunpack.i.l.bf16 %v3153_v2 }
 0x2ae   :  { %1727 = vmatpush.msrb.mxu2 %v1652_v8  ;;  %1747 = vmatpush.msra.mxu1 %v1653_v40  ;;  %v1402_v21 = vsel %vm266_vm11, %v2167_v9, %v2211_v50  ;;  %v2187_v8 = vunpack.i.h.bf16 %v3141_v14  ;;  %v1363_v2 = vsel %vm187_vm4, %v2182_v24, %v2256_v45 }
 0x2b0   :  { %1728 = vmatpush.msrb.mxu2 %v1613_v42  ;;  %1748 = vmatpush.msra.mxu1 %v1614_v48  ;;  %v2242_v42 = vunpack.i.h.bf16 %v3147_v44  ;;  %v2241_v48 = vunpack.i.l.bf16 %v3147_v44  ;;  %v1674_v44 = vsel %vm158_vm9, %v2246_v63, %v2247_v58 }
 0x2b2   :  { %v2220_v27 = vpop.permute.xlu1 %2219  ;;  %v1632_v38 = vsel %vm729_vm10, %v2241_v48, %v2242_v42 }
 0x2b3   :  { %v2222_v18 = vunpack.i.h.bf16 %v2220_v27  ;;  %v2221_v15 = vunpack.i.l.bf16 %v2220_v27  ;;  %v2202_v27 = vunpack.i.h.bf16 %v3143_v10  ;;  %v1631_v10 = vsel %vm729_vm10, %v2187_v8, %v2241_v48 }
 0x2b5   :  { %v1574_v0 = vsel %vm327_vm8, %v2221_v15, %v2222_v18  ;;  %v1575_v56 = vsel %vm327_vm8, %v2222_v18, %v2201_v51  ;;  %v2251_v18 = vunpack.i.l.bf16 %v3163_v19  ;;  %v1416_v15 = vpop.permute.xlu0 %1415 }
 0x2b6   :  { %1729 = vmatpush.msrb.mxu2 %v1574_v0  ;;  %1749 = vmatpush.msra.mxu1 %v1575_v56  ;;  %v2207_v0 = vunpack.i.h.bf16 %v3145_v30 }
 0x2b7   :  { %v1595_v56 = vsel %vm327_vm8, %v2202_v27, %v2251_v18  ;;  %v1596_v19 = vsel %vm327_vm8, %v2251_v18, %v2252_v3 }
 0x2b8   :  { %1730 = vmatpush.msrb.mxu2 %v1532_v4  ;;  %1750 = vmatpush.msra.mxu1 %v1533_v11 }
 0x2ba   :  { %v3174_v33 = vpop.permute.xlu1 %2234  ;;  %1731 = vmatpush.msrb.mxu2 %v3004_v43  ;;  %1751 = vmatpush.msra.mxu1 %v3022_v1  ;;  %v2181_v43 = vunpack.i.l.bf16 %v3135_v31  ;;  %v2197_v1 = vunpack.i.h.bf16 %v3149_v46  ;;  %v3199_v31 = vld [vmem:[%s3295_s3] sm:$0xff]  ;;  %s2396_s3 = smov [#allocation10]  }
 0x2bb   :  { %v2236_v23 = vunpack.i.l.bf16 %v3174_v33  ;;  %s1833_s20 = sshll.u32 %s2396_s3, 4  ;;  %s1834_s20 = int_to_ptr.vmem [resolvable:$true] %s1833_s20 }
 0x2bc   :  { %1732 = vmatpush.msrb.mxu2 %v1482_v16  ;;  %1752 = vmatpush.msra.mxu1 %v1483_v55  ;;  %v1362_v40 = vsel %vm187_vm4, %v2181_v43, %v2182_v24  ;;  %v1673_v14 = vsel %vm158_vm9, %v2197_v1, %v2246_v63  ;;  %v1151_v1 = vpop.f32.mrf.mxu3  ;;  %v1177_v63 = vpop.f32.mrf.mxu0 }
 0x2bd   :  { %v1441_v26 = vsel %vm356_vm5, %v2177_v7, %v2236_v23  ;;  %v2237_v7 = vunpack.i.h.bf16 %v3174_v33  ;;  %v1460_v30 = vpop.permute.xlu0 %1459  ;;  %v2212_v23 = vunpack.i.h.bf16 %v3157_v47  ;;  %v2257_v33 = vunpack.i.h.bf16 %v3180_v25 }
 0x2be   :  { %1733 = vmatpush.msrb.mxu2 %v1440_v59  ;;  %1753 = vmatpush.msra.mxu1 %v1441_v26 }
 0x2bf   :  { %v1461_v9 = vsel %vm356_vm5, %v2237_v7, %v3151_v13 }
 0x2c0   :  { %1734 = vmatpush.msrb.mxu2 %v1401_v37  ;;  %1754 = vmatpush.msra.mxu1 %v1402_v21  ;;  %v1099_v21 = vpop.f32.mrf.mxu1 }
 0x2c2   :  { %v2260_v46 = vpop.permute.xlu1 %2259  ;;  %1735 = vmatpush.msrb.mxu2 %v1362_v40  ;;  %1755 = vmatpush.msra.mxu1 %v1363_v2 }
 0x2c3   :  { %1874 = vmatmul.msk.f32.vlgmr.msrb.gmra.mxu2 %vm1716_vm12, %v3199_v31  ;;  %1875 = vmatmul.msk.f32.vlgmr.msra.gmra.mxu1 %vm1716_vm12, %v3199_v31  ;;  %v2261_v57 = vunpack.i.l.bf16 %v2260_v46  ;;  %v2262_v51 = vunpack.i.h.bf16 %v2260_v46 }
 0x2c4   :  { %1767 = vmatpush.msra.mxu2 %v1673_v14  ;;  %1787 = vmatpush.msrb.mxu1 %v1674_v44 }
 0x2c5   :  { %v1553_v4 = vsel %vm421_vm6, %v2207_v0, %v2261_v57  ;;  %v1554_v11 = vsel %vm421_vm6, %v2261_v57, %v2262_v51  ;;  %v959_v25 = vpop.permute.xlu0 %958 }
 0x2c6   :  { %1768 = vmatpush.msra.mxu2 %v1631_v10  ;;  %1788 = vmatpush.msrb.mxu1 %v1632_v38  ;;  %v996_v24 = vadd.f32 %v2989_v62, %v959_v25  ;;  %v1152_v37 = vadd.f32 %v1151_v1, %v959_v25  ;;  %v1100_v40 = vadd.f32 %v1099_v21, %v959_v25  ;;  %v1180_v21 = vpop.f32.mrf.mxu0 }
 0x2c8   :  { %1769 = vmatpush.msra.mxu2 %v1595_v56  ;;  %1789 = vmatpush.msrb.mxu1 %v1596_v19  ;;  %v1022_v59 = vadd.f32 %v2993_v60, %v996_v24  ;;  %v1126_v62 = vadd.f32 %v2991_v5, %v1100_v40  ;;  %v3250_v10 = vpop.f32.mrf.mxu1  ;;  %v1154_v24 = vpop.f32.mrf.mxu3 }
 0x2ca   :  { %v1380_v54 = vpop.permute.xlu1 %1379  ;;  %1770 = vmatpush.msra.mxu2 %v1553_v4  ;;  %1790 = vmatpush.msrb.mxu1 %v1554_v11  ;;  %v1870_v45 = vmul.f32 -1.442695, %v1022_v59  ;;  %v1872_v48 = vmul.f32 -1.442695, %v1126_v62 }
 0x2cb   :  { %v1383_v47 = vsel %vm187_vm4, %v2257_v33, %v1380_v54  ;;  %v1384_v50 = vsel %vm187_vm4, %v1380_v54, %v1382_v39 }
 0x2cc   :  { %1771 = vmatpush.msra.mxu2 %v3038_v34  ;;  %1791 = vmatpush.msrb.mxu1 %v3041_v17  ;;  %v1462_v34 = vsel %vm356_vm5, %v3151_v13, %v1460_v30  ;;  %v1419_v17 = vsel %vm266_vm11, %v2212_v23, %v1416_v15  ;;  %v1047_v13 = vpop.f32.mrf.mxu2 }
 0x2cd   :  { %v1048_v55 = vadd.f32 %v1047_v13, %v959_v25 }
 0x2ce   :  { %1772 = vmatpush.msra.mxu2 %v1503_v52  ;;  %1792 = vmatpush.msrb.mxu1 %v1504_v41 }
 0x2cf   :  { %v1074_v26 = vadd.f32 %v2981_v28, %v1048_v55 }
 0x2d0   :  { %1773 = vmatpush.msra.mxu2 %v1461_v9  ;;  %1793 = vmatpush.msrb.mxu1 %v1462_v34 }
 0x2d1   :  { %v1871_v43 = vmul.f32 -1.442695, %v1074_v26 }
 0x2d2   :  { %v1418_v61 = vpop.permute.xlu1 %1417  ;;  %1774 = vmatpush.msra.mxu2 %v1419_v17 }
 0x2d3   :  { %v1420_v16 = vsel %vm266_vm11, %v1416_v15, %v1418_v61  ;;  %2280 = vpow2.f32 %v1871_v43 }
 0x2d4   :  { %1794 = vmatpush.msrb.mxu1 %v1420_v16  ;;  %1775 = vmatpush.msra.mxu2 %v1383_v47  ;;  %2282 = vpow2.f32 %v1870_v45  ;;  %v1050_v57 = vpop.f32.mrf.mxu2 }
 0x2d5   :  { %1876 = vmatmul.msk.f32.vlgmr.msra.gmra.mxu2 %vm1716_vm12, %v3199_v31 }
 0x2d6   :  { %1795 = vmatpush.msrb.mxu1 %v1384_v50 }
 0x2d7   :  { %1877 = vmatmul.msk.f32.vlgmr.msrb.gmra.mxu1 %vm1716_vm12, %v3199_v31  ;;  %v1178_v31 = vadd.f32 %v1177_v63, %v1152_v37 }
 0x2d9   :  { %v2281_v58 = vpop.eup %2280  ;;  %v1873_v42 = vmul.f32 -1.442695, %v1178_v31 }
 0x2da   :  { %v1272_v8 = vadd.f32 1.0, %v2281_v58  ;;  %v2283_v46 = vpop.eup %2282  ;;  %v3252_v51 = vpop.permute.xlu1 %963 }
 0x2db   :  { %v1271_v28 = vadd.f32 1.0, %v2283_v46  ;;  %v1051_v56 = vadd.f32 %v1050_v57, %v3252_v51  ;;  %v999_v7 = vadd.f32 %v2995_v49, %v3252_v51  ;;  %v1155_v37 = vadd.f32 %v1154_v24, %v3252_v51 }
 0x2dc   :  { %2284 = vrcp.f32 %v1272_v8  ;;  %v1301_v36 = vand.u32 2147483648, %v1272_v8  ;;  %vm1295_vm5 = vweird.f32 %v1272_v8  ;;  %v1299_v4 = vand.u32 2147483647, %v1272_v8 }
 0x2dd   :  { %2286 = vpow2.f32 %v1873_v42  ;;  %v1077_v11 = vadd.f32 %v2985_v6, %v1051_v56  ;;  %v1286_v33 = vand.u32 2147483648, %v1271_v28  ;;  %vm1280_vm9 = vweird.f32 %v1271_v28 }
 0x2de   :  { %2288 = vrcp.f32 %v1271_v28  ;;  %v1302_v41 = vor.u32 1.1754944e-38, %v1301_v36  ;;  %vm1300_vm8 = vcmp.eq.f32.partialorder %v1299_v4, 8.507059e+37  ;;  %v1284_v61 = vand.u32 2147483647, %v1271_v28 }
 0x2df   :  { %2290 = vpow2.f32 %v1872_v48  ;;  %v1025_v16 = vadd.f32 %v2999_v32, %v999_v7  ;;  %v1287_v13 = vor.u32 1.1754944e-38, %v1286_v33  ;;  %v1181_v42 = vadd.f32 %v1180_v21, %v1155_v37 }
 0x2e0   :  { %vm1285_vm11 = vcmp.eq.f32.partialorder %v1284_v61, 8.507059e+37  ;;  %v1103_v48 = vadd.f32 %v3250_v10, %v3252_v51 }
 0x2e2   :  { %v2285_v60 = vpop.eup %2284  ;;  %v1129_v57 = vadd.f32 %v2997_v53, %v1103_v48 }
 0x2e3   :  { %v1291_v2 = vmul.f32 %v2285_v60, %v1272_v8  ;;  %v2287_v27 = vpop.eup %2286  ;;  %vm1296_vm4 = vweird.f32 %v2285_v60 }
 0x2e4   :  { %v2289_v18 = vpop.eup %2288  ;;  %v3248_v14 = vadd.f32 1.0, %v2287_v27  ;;  %vm1297_vm6 = vmor %vm1295_vm5, %vm1296_vm4 }
 0x2e5   :  { %v1292_v15 = vsub.f32 1.0, %v1291_v2  ;;  %v1276_v3 = vmul.f32 %v2289_v18, %v1271_v28  ;;  %v2291_v44 = vpop.eup %2290  ;;  %vm1281_vm7 = vweird.f32 %v2289_v18 }
 0x2e6   :  { %2292 = vrcp.f32 %v3248_v14  ;;  %v3255_v0 = vadd.f32 1.0, %v2291_v44  ;;  %vm1282_vm10 = vmor %vm1280_vm9, %vm1281_vm7  ;;  %v1331_v46 = vand.u32 2147483648, %v3248_v14  ;;  %vm1325_vm14 = vweird.f32 %v3248_v14 }
 0x2e7   :  { %v1293_v38 = vmul.f32 %v2285_v60, %v1292_v15  ;;  %v1277_v5 = vsub.f32 1.0, %v1276_v3  ;;  %v1329_v62 = vand.u32 2147483647, %v3248_v14 }
 0x2e8   :  { %2294 = vrcp.f32 %v3255_v0  ;;  %vm1310_vm2 = vweird.f32 %v3255_v0 }
 0x2e9   :  { %v1294_v19 = vadd.f32 %v2285_v60, %v1293_v38  ;;  %v1278_v35 = vmul.f32 %v2289_v18, %v1277_v5  ;;  %vm1330_vm1 = vcmp.eq.f32.partialorder %v1329_v62, 8.507059e+37 }
 0x2eb   :  { %v1298_v30 = vsel %vm1297_vm6, %v2285_v60, %v1294_v19  ;;  %v1279_v9 = vadd.f32 %v2289_v18, %v1278_v35 }
 0x2ec   :  { %v3259_v54 = vpop.eup %2292  ;;  %v1303_v17 = vsel %vm1300_vm8, %v1302_v41, %v1298_v30 }
 0x2ed   :  { %v1321_v34 = vmul.f32 %v3259_v54, %v3248_v14  ;;  %v1283_v49 = vsel %vm1282_vm10, %v2289_v18, %v1279_v9  ;;  %v1807_v50 = vsub.f32 1.0, %v1303_v17  ;;  %vm1326_vm13 = vweird.f32 %v3259_v54 }
 0x2ee   :  { %v2295_v6 = vpop.eup %2294  ;;  %v1288_v26 = vsel %vm1285_vm11, %v1287_v13, %v1283_v49  ;;  %vm1327_vm15 = vmor %vm1325_vm14, %vm1326_vm13  ;;  %v1332_v18 = vor.u32 1.1754944e-38, %v1331_v46  ;;  %v1314_v14 = vand.u32 2147483647, %v3255_v0 }
 0x2ef   :  { %v1322_v47 = vsub.f32 1.0, %v1321_v34  ;;  %v1306_v55 = vmul.f32 %v2295_v6, %v3255_v0  ;;  %v1809_v59 = vmul.f32 %v1807_v50, %v3012_v29  ;;  %v1806_v32 = vsub.f32 1.0, %v1288_v26 }
 0x2f0   :  { %vm1311_vm0 = vweird.f32 %v2295_v6  ;;  %vm1315_vm12 = vcmp.eq.f32.partialorder %v1314_v14, 8.507059e+37 }
 0x2f1   :  { %v1323_v1 = vmul.f32 %v3259_v54, %v1322_v47  ;;  %v1307_v58 = vsub.f32 1.0, %v1306_v55  ;;  %v1808_v40 = vmul.f32 %v1806_v32, %v3001_v12  ;;  %v1316_v12 = vand.u32 2147483648, %v3255_v0  ;;  %vm1312_vm3 = vmor %vm1310_vm2, %vm1311_vm0 }
 0x2f3   :  { %v1324_v31 = vadd.f32 %v3259_v54, %v1323_v1  ;;  %v1308_v28 = vmul.f32 %v2295_v6, %v1307_v58  ;;  %v1317_v5 = vor.u32 1.1754944e-38, %v1316_v12 }
 0x2f5   :  { %v1328_v2 = vsel %vm1327_vm15, %v3259_v54, %v1324_v31  ;;  %v1309_v3 = vadd.f32 %v2295_v6, %v1308_v28 }
 0x2f6   :  { %v1333_v44 = vsel %vm1330_vm1, %v1332_v18, %v1328_v2 }
 0x2f7   :  { %v1313_v10 = vsel %vm1312_vm3, %v2295_v6, %v1309_v3  ;;  %v1819_v38 = vsub.f32 1.0, %v1333_v44 }
 0x2f8   :  { %v1318_v19 = vsel %vm1315_vm12, %v1317_v5, %v1313_v10 }
 0x2f9   :  { %v1821_v35 = vmul.f32 %v1819_v38, %v3035_v20  ;;  %v1818_v54 = vsub.f32 1.0, %v1318_v19 }
 0x2fb   :  { %v1820_v53 = vmul.f32 %v1818_v54, %v3033_v22 }
 0x340   :  { %v1757_v52 = vpop.f32.mrf.mxu1 }
 0x341   :  { %v1758_v23 = vadd.f32 %v1757_v52, %v1077_v11 }
 0x343   :  { %2296 = vtanh.f32 %v1758_v23 }
 0x346   :  { %v1737_v39 = vpop.f32.mrf.mxu2 }
 0x347   :  { %v1738_v25 = vadd.f32 %v1737_v39, %v1025_v16 }
 0x349   :  { %2298 = vtanh.f32 %v1738_v25  ;;  %v2297_v43 = vpop.eup %2296 }
 0x34a   :  { %v1811_v45 = vmul.f32 %v2297_v43, %v1303_v17 }
 0x34c   :  { %v1813_v63 = vadd.f32 %v1811_v45, %v1809_v59 }
 0x34e   :  { %1815 = vst [vmem:[#allocation10 + $0x8] sm:$0xff] %v1813_v63 }
 0x34f   :  { %v2299_v8 = vpop.eup %2298 }
 0x350   :  { %v1810_v29 = vmul.f32 %v2299_v8, %v1288_v26 }
 0x352   :  { %v1812_v60 = vadd.f32 %v1810_v29, %v1808_v40 }
 0x354   :  { %v1797_v27 = vpop.f32.mrf.mxu1  ;;  %1814 = vst [vmem:[#allocation10] sm:$0xff] %v1812_v60 }
 0x355   :  { %v1798_v15 = vadd.f32 %v1797_v27, %v1181_v42 }
 0x357   :  { %2300 = vtanh.f32 %v1798_v15 }
 0x358   :  { %v1777_v51 = vpop.f32.mrf.mxu2 }
 0x359   :  { %v1778_v56 = vadd.f32 %v1777_v51, %v1129_v57 }
 0x35b   :  { %2302 = vtanh.f32 %v1778_v56 }
 0x35d   :  { %v2301_v36 = vpop.eup %2300 }
 0x35e   :  { %v1823_v4 = vmul.f32 %v2301_v36, %v1333_v44 }
 0x360   :  { %v1825_v11 = vadd.f32 %v1823_v4, %v1821_v35 }
 0x361   :  { %v2303_v7 = vpop.eup %2302 }
 0x362   :  { %1828 = vst [vmem:[#allocation10 + $0x18] sm:$0xff] %v1825_v11  ;;  %v1822_v0 = vmul.f32 %v2303_v7, %v1318_v19 }
 0x364   :  { %v1824_v30 = vadd.f32 %v1822_v0, %v1820_v53 }
 0x366   :  { %1827 = vst [vmem:[#allocation10 + $0x10] sm:$0xff] %v1824_v30 }
 0x367   :  { %1841 = dma.vmem_to_hbm [thread:$0]  %s1834_s20, 512, %s1836_s23, [#allocation7], %s2384_s26, %s2384_s26, %s2385_s27  }
 0x368   :  { %2381 = dma.done.wait [#allocation7], 512  }
 0x369   :  { %2382 = vsyncadd [#allocation7], 4294966784 }
 0x36a   :  { %1846 = vsyncpa [#allocation6], 1 }
 0x36b   :  { %1847 = vsyncpa [#allocation9], 1 }
 0x36c   :  { %1848 = vsyncpa [#allocation7], 1 }

</bundles_post_ra>
